<compile_context>
chip_gen: v6e
topology: v6e:2x2x1
jax: 0.10.0
libtpu: 0.0.40
codegen_flags: <defaults>
</compile_context>

<pallas_src>
import jax
import jax.numpy as jnp
import numpy as np
from jax import lax
from jax.experimental import pallas as pl
from jax.experimental.pallas import tpu as pltpu

HID = 64        # self.hidden_size
MLP_H = 128     # first MLP width
EPS = 1e-5      # InstanceNorm1d default eps
OUT_PAD = 128   # lane-dense output slab width (cols 0:5 -> out_1, cols 5:8 -> out_2)


def _instnorm_lastdim(x):
    # nn.InstanceNorm1d(affine=False): per-row normalization over the last dim (biased var).
    mu = jnp.mean(x, axis=-1, keepdims=True)
    var = jnp.mean((x - mu) ** 2, axis=-1, keepdims=True)
    return (x - mu) * lax.rsqrt(var + EPS)


# --------------------------------------------------------------- fused kernel
def fused_kernel(x_ref,
                 w1_ref, b1_ref, w2_ref, b2_ref,          # MLP
                 wih_ref, bih_ref,                        # GRU input projection (hoisted)
                 whh_r_ref, whh_z_ref, whh_n_ref,         # gate-major recurrent weights
                 bhh_r_ref, bhh_z_ref, bhh_n_ref,
                 hw1_ref, hb1_ref, hw2_ref, hb2_ref,      # fused heads
                 out_ref):
    B, T, F = x_ref.shape

    # ---- MLP on all B*T rows at once ----
    x = x_ref[...].reshape(B * T, F)
    h = jnp.dot(x, w1_ref[...], preferred_element_type=jnp.float32) + b1_ref[...]
    h = _instnorm_lastdim(jnp.maximum(h, 0.0))            # Dropout(0.1): identity at inference
    feat = jnp.dot(h, w2_ref[...], preferred_element_type=jnp.float32) + b2_ref[...]
    feat = _instnorm_lastdim(jnp.maximum(feat, 0.0))      # (B*T, HID)

    # ---- GRU input projection hoisted out of the recurrence: ONE matmul for all timesteps ----
    gi = jnp.dot(feat, wih_ref[...], preferred_element_type=jnp.float32) + bih_ref[...]  # (B*T, 3H)
    # Split gates once, OUTSIDE the serial loop (PyTorch gate order: r, z, n).
    gi_r = gi[:, 0 * HID:1 * HID].reshape(B, T, HID)
    gi_z = gi[:, 1 * HID:2 * HID].reshape(B, T, HID)
    gi_n = gi[:, 2 * HID:3 * HID].reshape(B, T, HID)

    whh_r = whh_r_ref[...]; whh_z = whh_z_ref[...]; whh_n = whh_n_ref[...]
    bhh_r = bhh_r_ref[...]; bhh_z = bhh_z_ref[...]; bhh_n = bhh_n_ref[...]

    # ---- recurrence: fully unrolled (T small & static); only the h @ whh matmuls remain ----
    h_t = jnp.zeros((B, HID), jnp.float32)
    for t in range(T):
        gh_r = jnp.dot(h_t, whh_r, preferred_element_type=jnp.float32) + bhh_r
        gh_z = jnp.dot(h_t, whh_z, preferred_element_type=jnp.float32) + bhh_z
        gh_n = jnp.dot(h_t, whh_n, preferred_element_type=jnp.float32) + bhh_n
        r = jax.nn.sigmoid(gi_r[:, t, :] + gh_r)
        z = jax.nn.sigmoid(gi_z[:, t, :] + gh_z)
        n = jnp.tanh(gi_n[:, t, :] + r * gh_n)
        h_t = (1.0 - z) * n + z * h_t                     # h_T after last iteration

    # ---- both heads fused: one first-layer matmul, per-head InstanceNorm, block-diag second layer ----
    y = jnp.dot(h_t, hw1_ref[...], preferred_element_type=jnp.float32) + hb1_ref[...]
    y = jnp.maximum(y, 0.0)                               # (B, 64) = [head1(32) | head2(32)]
    y1 = _instnorm_lastdim(y[:, :HID // 2])
    y2 = _instnorm_lastdim(y[:, HID // 2:])
    yn = jnp.concatenate([y1, y2], axis=-1)               # (B, 64)
    # Lane-dense (B, 128) output slab: single unmasked store.
    out_ref[...] = jnp.dot(yn, hw2_ref[...], preferred_element_type=jnp.float32) + hb2_ref[...]


# ------------------------------------------------------------------- wrapper
@jax.jit
def gru_classifier_forward(x, p):
    B, T, F = x.shape
    H2 = HID // 2

    # Gate-major recurrent weights/biases (avoid 64-lane slicing inside the serial loop).
    whh_r, whh_z, whh_n = p['whh'][:, :HID], p['whh'][:, HID:2 * HID], p['whh'][:, 2 * HID:]
    bhh_r, bhh_z, bhh_n = p['bhh'][:, :HID], p['bhh'][:, HID:2 * HID], p['bhh'][:, 2 * HID:]

    # Fuse both heads' first layers; build a block-diagonal, lane-padded second layer.
    hw1 = jnp.concatenate([p['fc1_w1'], p['fc2_w1']], axis=1)     # (64, 64)
    hb1 = jnp.concatenate([p['fc1_b1'], p['fc2_b1']], axis=1)     # (1, 64)
    hw2 = jnp.zeros((HID, OUT_PAD), jnp.float32)
    hw2 = hw2.at[:H2, 0:5].set(p['fc1_w2']).at[H2:, 5:8].set(p['fc2_w2'])
    hb2 = jnp.zeros((1, OUT_PAD), jnp.float32)
    hb2 = hb2.at[:, 0:5].set(p['fc1_b2']).at[:, 5:8].set(p['fc2_b2'])

    vmem = pl.BlockSpec(memory_space=pltpu.MemorySpace.VMEM)
    out = pl.pallas_call(
        fused_kernel,
        out_shape=jax.ShapeDtypeStruct((B, OUT_PAD), jnp.float32),
        in_specs=[vmem] * 17,
        out_specs=vmem,
    )(x, p['mlp_w1'], p['mlp_b1'], p['mlp_w2'], p['mlp_b2'],
      p['wih'], p['bih'],
      whh_r, whh_z, whh_n, bhh_r, bhh_z, bhh_n,
      hw1, hb1, hw2, hb2)

    # Slice the padded lane-dense slab back to the module's output widths.
    return out[:, :5], out[:, 5:8]


# ------------------------------------------------------------- params & reference
def init_params(key, input_size):
    ks = jax.random.split(key, 10)

    def lin(k, fan_in, fan_out):
        k1, k2 = jax.random.split(k)
        bound = 1.0 / np.sqrt(fan_in)
        w = jax.random.uniform(k1, (fan_in, fan_out), jnp.float32, -bound, bound)
        b = jax.random.uniform(k2, (1, fan_out), jnp.float32, -bound, bound)
        return w, b

    p = {}
    p['mlp_w1'], p['mlp_b1'] = lin(ks[0], input_size, MLP_H)
    p['mlp_w2'], p['mlp_b2'] = lin(ks[1], MLP_H, HID)
    gb = 1.0 / np.sqrt(HID)
    p['wih'] = jax.random.uniform(ks[2], (HID, 3 * HID), jnp.float32, -gb, gb)
    p['whh'] = jax.random.uniform(ks[3], (HID, 3 * HID), jnp.float32, -gb, gb)
    p['bih'] = jax.random.uniform(ks[4], (1, 3 * HID), jnp.float32, -gb, gb)
    p['bhh'] = jax.random.uniform(ks[5], (1, 3 * HID), jnp.float32, -gb, gb)
    p['fc1_w1'], p['fc1_b1'] = lin(ks[6], HID, HID // 2)
    p['fc1_w2'], p['fc1_b2'] = lin(ks[7], HID // 2, 5)
    p['fc2_w1'], p['fc2_b1'] = lin(ks[8], HID, HID // 2)
    p['fc2_w2'], p['fc2_b2'] = lin(ks[9], HID // 2, 3)
    return p


def ref_forward(x, p):
    B, T, F = x.shape
    xf = x.reshape(B * T, F)
    h = _instnorm_lastdim(jnp.maximum(xf @ p['mlp_w1'] + p['mlp_b1'], 0.0))
    h = _instnorm_lastdim(jnp.maximum(h @ p['mlp_w2'] + p['mlp_b2'], 0.0))
    seq = h.reshape(B, T, HID)
    hs = jnp.zeros((B, HID), jnp.float32)
    for t in range(T):
        gi = seq[:, t] @ p['wih'] + p['bih']
        gh = hs @ p['whh'] + p['bhh']
        r = jax.nn.sigmoid(gi[:, :HID] + gh[:, :HID])
        z = jax.nn.sigmoid(gi[:, HID:2 * HID] + gh[:, HID:2 * HID])
        n = jnp.tanh(gi[:, 2 * HID:] + r * gh[:, 2 * HID:])
        hs = (1.0 - z) * n + z * hs

    def head(w1, b1, w2, b2):
        y = _instnorm_lastdim(jnp.maximum(hs @ w1 + b1, 0.0))
        return y @ w2 + b2

    return (head(p['fc1_w1'], p['fc1_b1'], p['fc1_w2'], p['fc1_b2']),
            head(p['fc2_w1'], p['fc2_b1'], p['fc2_w2'], p['fc2_b2']))


if __name__ == "__main__":
    B, T, F = 2, 8, 16   # batch=2, seq=8, input_size=16
    key = jax.random.PRNGKey(0)
    kx, kp = jax.random.split(key)
    x = jax.random.normal(kx, (B, T, F), jnp.float32)
    params = init_params(kp, F)

    o1, o2 = gru_classifier_forward(x, params)
    jax.block_until_ready((o1, o2))

    r1, r2 = ref_forward(x, params)
    assert o1.shape == (B, 5) and o2.shape == (B, 3)
    assert np.allclose(np.asarray(o1), np.asarray(r1), rtol=1e-4, atol=1e-4)
    assert np.allclose(np.asarray(o2), np.asarray(r2), rtol=1e-4, atol=1e-4)
    print("KERNEL_OK")
</pallas_src>

<mosaic_0001>
module attributes {stable_mosaic.version = 11 : i64} {
  func.func @fused_kernel(%arg0: memref<2x8x16xf32, #tpu.memory_space<vmem>>, %arg1: memref<16x128xf32, #tpu.memory_space<vmem>>, %arg2: memref<1x128xf32, #tpu.memory_space<vmem>>, %arg3: memref<128x64xf32, #tpu.memory_space<vmem>>, %arg4: memref<1x64xf32, #tpu.memory_space<vmem>>, %arg5: memref<64x192xf32, #tpu.memory_space<vmem>>, %arg6: memref<1x192xf32, #tpu.memory_space<vmem>>, %arg7: memref<64x64xf32, #tpu.memory_space<vmem>>, %arg8: memref<64x64xf32, #tpu.memory_space<vmem>>, %arg9: memref<64x64xf32, #tpu.memory_space<vmem>>, %arg10: memref<1x64xf32, #tpu.memory_space<vmem>>, %arg11: memref<1x64xf32, #tpu.memory_space<vmem>>, %arg12: memref<1x64xf32, #tpu.memory_space<vmem>>, %arg13: memref<64x64xf32, #tpu.memory_space<vmem>>, %arg14: memref<1x64xf32, #tpu.memory_space<vmem>>, %arg15: memref<64x128xf32, #tpu.memory_space<vmem>>, %arg16: memref<1x128xf32, #tpu.memory_space<vmem>>, %arg17: memref<2x128xf32, #tpu.memory_space<vmem>>) attributes {dimension_semantics = [], scalar_prefetch = 0 : i64, scratch_operands = 0 : i64, tpu.core_type = #tpu.core_type<tc>} {
    %c0 = arith.constant 0 : index
    %c0_0 = arith.constant 0 : index
    %c0_1 = arith.constant 0 : index
    %0 = vector.load %arg0[%c0, %c0_0, %c0_1] : memref<2x8x16xf32, #tpu.memory_space<vmem>>, vector<2x8x16xf32>
    %1 = vector.shape_cast %0 : vector<2x8x16xf32> to vector<16x16xf32>
    %c0_2 = arith.constant 0 : index
    %c0_3 = arith.constant 0 : index
    %2 = vector.load %arg1[%c0_2, %c0_3] : memref<16x128xf32, #tpu.memory_space<vmem>>, vector<16x128xf32>
    %cst = arith.constant dense<0.000000e+00> : vector<16x128xf32>
    %3 = tpu.matmul %1, %2, %cst {dimension_numbers = #tpu.dot_dimension_numbers<[1], [0], [0], [1], [0, 0, 1, 1], [], []>} : vector<16x16xf32>, vector<16x128xf32>, vector<16x128xf32> -> vector<16x128xf32>
    %c0_4 = arith.constant 0 : index
    %c0_5 = arith.constant 0 : index
    %4 = vector.load %arg2[%c0_4, %c0_5] : memref<1x128xf32, #tpu.memory_space<vmem>>, vector<1x128xf32>
    %5 = vector.broadcast %4 : vector<1x128xf32> to vector<16x128xf32>
    %6 = arith.addf %3, %5 : vector<16x128xf32>
    %cst_6 = arith.constant 0.000000e+00 : f32
    %7 = vector.broadcast %cst_6 : f32 to vector<16x128xf32>
    %8 = arith.maximumf %6, %7 : vector<16x128xf32>
    %cst_7 = arith.constant dense<0.000000e+00> : vector<16xf32>
    %9 = vector.multi_reduction <add>, %8, %cst_7 [1] : vector<16x128xf32> to vector<16xf32>
    %10 = vector.shape_cast %9 : vector<16xf32> to vector<16x1xf32>
    %cst_8 = arith.constant 1.280000e+02 : f32
    %11 = vector.broadcast %cst_8 : f32 to vector<16x1xf32>
    %12 = arith.divf %10, %11 : vector<16x1xf32>
    %13 = vector.broadcast %12 : vector<16x1xf32> to vector<16x128xf32>
    %14 = arith.subf %8, %13 : vector<16x128xf32>
    %15 = arith.mulf %14, %14 : vector<16x128xf32>
    %cst_9 = arith.constant dense<0.000000e+00> : vector<16xf32>
    %16 = vector.multi_reduction <add>, %15, %cst_9 [1] : vector<16x128xf32> to vector<16xf32>
    %17 = vector.shape_cast %16 : vector<16xf32> to vector<16x1xf32>
    %cst_10 = arith.constant 1.280000e+02 : f32
    %18 = vector.broadcast %cst_10 : f32 to vector<16x1xf32>
    %19 = arith.divf %17, %18 : vector<16x1xf32>
    %20 = vector.broadcast %12 : vector<16x1xf32> to vector<16x128xf32>
    %21 = arith.subf %8, %20 : vector<16x128xf32>
    %cst_11 = arith.constant 9.99999974E-6 : f32
    %22 = vector.broadcast %cst_11 : f32 to vector<16x1xf32>
    %23 = arith.addf %19, %22 : vector<16x1xf32>
    %24 = math.rsqrt %23 : vector<16x1xf32>
    %25 = vector.broadcast %24 : vector<16x1xf32> to vector<16x128xf32>
    %26 = arith.mulf %21, %25 : vector<16x128xf32>
    %c0_12 = arith.constant 0 : index
    %c0_13 = arith.constant 0 : index
    %27 = vector.load %arg3[%c0_12, %c0_13] : memref<128x64xf32, #tpu.memory_space<vmem>>, vector<128x64xf32>
    %cst_14 = arith.constant dense<0.000000e+00> : vector<16x64xf32>
    %28 = tpu.matmul %26, %27, %cst_14 {dimension_numbers = #tpu.dot_dimension_numbers<[1], [0], [0], [1], [0, 0, 1, 1], [], []>} : vector<16x128xf32>, vector<128x64xf32>, vector<16x64xf32> -> vector<16x64xf32>
    %c0_15 = arith.constant 0 : index
    %c0_16 = arith.constant 0 : index
    %29 = vector.load %arg4[%c0_15, %c0_16] : memref<1x64xf32, #tpu.memory_space<vmem>>, vector<1x64xf32>
    %30 = vector.broadcast %29 : vector<1x64xf32> to vector<16x64xf32>
    %31 = arith.addf %28, %30 : vector<16x64xf32>
    %cst_17 = arith.constant 0.000000e+00 : f32
    %32 = vector.broadcast %cst_17 : f32 to vector<16x64xf32>
    %33 = arith.maximumf %31, %32 : vector<16x64xf32>
    %cst_18 = arith.constant dense<0.000000e+00> : vector<16xf32>
    %34 = vector.multi_reduction <add>, %33, %cst_18 [1] : vector<16x64xf32> to vector<16xf32>
    %35 = vector.shape_cast %34 : vector<16xf32> to vector<16x1xf32>
    %cst_19 = arith.constant 6.400000e+01 : f32
    %36 = vector.broadcast %cst_19 : f32 to vector<16x1xf32>
    %37 = arith.divf %35, %36 : vector<16x1xf32>
    %38 = vector.broadcast %37 : vector<16x1xf32> to vector<16x64xf32>
    %39 = arith.subf %33, %38 : vector<16x64xf32>
    %40 = arith.mulf %39, %39 : vector<16x64xf32>
    %cst_20 = arith.constant dense<0.000000e+00> : vector<16xf32>
    %41 = vector.multi_reduction <add>, %40, %cst_20 [1] : vector<16x64xf32> to vector<16xf32>
    %42 = vector.shape_cast %41 : vector<16xf32> to vector<16x1xf32>
    %cst_21 = arith.constant 6.400000e+01 : f32
    %43 = vector.broadcast %cst_21 : f32 to vector<16x1xf32>
    %44 = arith.divf %42, %43 : vector<16x1xf32>
    %45 = vector.broadcast %37 : vector<16x1xf32> to vector<16x64xf32>
    %46 = arith.subf %33, %45 : vector<16x64xf32>
    %cst_22 = arith.constant 9.99999974E-6 : f32
    %47 = vector.broadcast %cst_22 : f32 to vector<16x1xf32>
    %48 = arith.addf %44, %47 : vector<16x1xf32>
    %49 = math.rsqrt %48 : vector<16x1xf32>
    %50 = vector.broadcast %49 : vector<16x1xf32> to vector<16x64xf32>
    %51 = arith.mulf %46, %50 : vector<16x64xf32>
    %c0_23 = arith.constant 0 : index
    %c0_24 = arith.constant 0 : index
    %52 = vector.load %arg5[%c0_23, %c0_24] : memref<64x192xf32, #tpu.memory_space<vmem>>, vector<64x192xf32>
    %cst_25 = arith.constant dense<0.000000e+00> : vector<16x192xf32>
    %53 = tpu.matmul %51, %52, %cst_25 {dimension_numbers = #tpu.dot_dimension_numbers<[1], [0], [0], [1], [0, 0, 1, 1], [], []>} : vector<16x64xf32>, vector<64x192xf32>, vector<16x192xf32> -> vector<16x192xf32>
    %c0_26 = arith.constant 0 : index
    %c0_27 = arith.constant 0 : index
    %54 = vector.load %arg6[%c0_26, %c0_27] : memref<1x192xf32, #tpu.memory_space<vmem>>, vector<1x192xf32>
    %55 = vector.broadcast %54 : vector<1x192xf32> to vector<16x192xf32>
    %56 = arith.addf %53, %55 : vector<16x192xf32>
    %57 = vector.extract_strided_slice %56 {offsets = [0, 0], sizes = [16, 64], strides = [1, 1]} : vector<16x192xf32> to vector<16x64xf32>
    %58 = vector.shape_cast %57 : vector<16x64xf32> to vector<2x8x64xf32>
    %59 = vector.extract_strided_slice %56 {offsets = [0, 64], sizes = [16, 64], strides = [1, 1]} : vector<16x192xf32> to vector<16x64xf32>
    %60 = vector.shape_cast %59 : vector<16x64xf32> to vector<2x8x64xf32>
    %61 = vector.extract_strided_slice %56 {offsets = [0, 128], sizes = [16, 64], strides = [1, 1]} : vector<16x192xf32> to vector<16x64xf32>
    %62 = vector.shape_cast %61 : vector<16x64xf32> to vector<2x8x64xf32>
    %c0_28 = arith.constant 0 : index
    %c0_29 = arith.constant 0 : index
    %63 = vector.load %arg7[%c0_28, %c0_29] : memref<64x64xf32, #tpu.memory_space<vmem>>, vector<64x64xf32>
    %c0_30 = arith.constant 0 : index
    %c0_31 = arith.constant 0 : index
    %64 = vector.load %arg8[%c0_30, %c0_31] : memref<64x64xf32, #tpu.memory_space<vmem>>, vector<64x64xf32>
    %c0_32 = arith.constant 0 : index
    %c0_33 = arith.constant 0 : index
    %65 = vector.load %arg9[%c0_32, %c0_33] : memref<64x64xf32, #tpu.memory_space<vmem>>, vector<64x64xf32>
    %c0_34 = arith.constant 0 : index
    %c0_35 = arith.constant 0 : index
    %66 = vector.load %arg10[%c0_34, %c0_35] : memref<1x64xf32, #tpu.memory_space<vmem>>, vector<1x64xf32>
    %c0_36 = arith.constant 0 : index
    %c0_37 = arith.constant 0 : index
    %67 = vector.load %arg11[%c0_36, %c0_37] : memref<1x64xf32, #tpu.memory_space<vmem>>, vector<1x64xf32>
    %c0_38 = arith.constant 0 : index
    %c0_39 = arith.constant 0 : index
    %68 = vector.load %arg12[%c0_38, %c0_39] : memref<1x64xf32, #tpu.memory_space<vmem>>, vector<1x64xf32>
    %cst_40 = arith.constant 0.000000e+00 : f32
    %69 = vector.broadcast %cst_40 : f32 to vector<2x64xf32>
    %cst_41 = arith.constant dense<0.000000e+00> : vector<2x64xf32>
    %70 = tpu.matmul %69, %63, %cst_41 {dimension_numbers = #tpu.dot_dimension_numbers<[1], [0], [0], [1], [0, 0, 1, 1], [], []>} : vector<2x64xf32>, vector<64x64xf32>, vector<2x64xf32> -> vector<2x64xf32>
    %71 = vector.broadcast %66 : vector<1x64xf32> to vector<2x64xf32>
    %72 = arith.addf %70, %71 : vector<2x64xf32>
    %cst_42 = arith.constant dense<0.000000e+00> : vector<2x64xf32>
    %73 = tpu.matmul %69, %64, %cst_42 {dimension_numbers = #tpu.dot_dimension_numbers<[1], [0], [0], [1], [0, 0, 1, 1], [], []>} : vector<2x64xf32>, vector<64x64xf32>, vector<2x64xf32> -> vector<2x64xf32>
    %74 = vector.broadcast %67 : vector<1x64xf32> to vector<2x64xf32>
    %75 = arith.addf %73, %74 : vector<2x64xf32>
    %cst_43 = arith.constant dense<0.000000e+00> : vector<2x64xf32>
    %76 = tpu.matmul %69, %65, %cst_43 {dimension_numbers = #tpu.dot_dimension_numbers<[1], [0], [0], [1], [0, 0, 1, 1], [], []>} : vector<2x64xf32>, vector<64x64xf32>, vector<2x64xf32> -> vector<2x64xf32>
    %77 = vector.broadcast %68 : vector<1x64xf32> to vector<2x64xf32>
    %78 = arith.addf %76, %77 : vector<2x64xf32>
    %79 = vector.extract_strided_slice %58 {offsets = [0, 0, 0], sizes = [2, 1, 64], strides = [1, 1, 1]} : vector<2x8x64xf32> to vector<2x1x64xf32>
    %80 = vector.shape_cast %79 : vector<2x1x64xf32> to vector<2x64xf32>
    %81 = arith.addf %80, %72 : vector<2x64xf32>
    %82 = arith.negf %81 : vector<2x64xf32>
    %83 = math.exp %82 : vector<2x64xf32>
    %cst_44 = arith.constant 1.000000e+00 : f32
    %84 = vector.broadcast %cst_44 : f32 to vector<2x64xf32>
    %85 = arith.addf %84, %83 : vector<2x64xf32>
    %86 = arith.divf %84, %85 : vector<2x64xf32>
    %87 = vector.extract_strided_slice %60 {offsets = [0, 0, 0], sizes = [2, 1, 64], strides = [1, 1, 1]} : vector<2x8x64xf32> to vector<2x1x64xf32>
    %88 = vector.shape_cast %87 : vector<2x1x64xf32> to vector<2x64xf32>
    %89 = arith.addf %88, %75 : vector<2x64xf32>
    %90 = arith.negf %89 : vector<2x64xf32>
    %91 = math.exp %90 : vector<2x64xf32>
    %cst_45 = arith.constant 1.000000e+00 : f32
    %92 = vector.broadcast %cst_45 : f32 to vector<2x64xf32>
    %93 = arith.addf %92, %91 : vector<2x64xf32>
    %94 = arith.divf %92, %93 : vector<2x64xf32>
    %95 = vector.extract_strided_slice %62 {offsets = [0, 0, 0], sizes = [2, 1, 64], strides = [1, 1, 1]} : vector<2x8x64xf32> to vector<2x1x64xf32>
    %96 = vector.shape_cast %95 : vector<2x1x64xf32> to vector<2x64xf32>
    %97 = arith.mulf %86, %78 : vector<2x64xf32>
    %98 = arith.addf %96, %97 : vector<2x64xf32>
    %99 = math.tanh %98 : vector<2x64xf32>
    %cst_46 = arith.constant 1.000000e+00 : f32
    %100 = vector.broadcast %cst_46 : f32 to vector<2x64xf32>
    %101 = arith.subf %100, %94 : vector<2x64xf32>
    %102 = arith.mulf %101, %99 : vector<2x64xf32>
    %103 = arith.mulf %94, %69 : vector<2x64xf32>
    %104 = arith.addf %102, %103 : vector<2x64xf32>
    %cst_47 = arith.constant dense<0.000000e+00> : vector<2x64xf32>
    %105 = tpu.matmul %104, %63, %cst_47 {dimension_numbers = #tpu.dot_dimension_numbers<[1], [0], [0], [1], [0, 0, 1, 1], [], []>} : vector<2x64xf32>, vector<64x64xf32>, vector<2x64xf32> -> vector<2x64xf32>
    %106 = vector.broadcast %66 : vector<1x64xf32> to vector<2x64xf32>
    %107 = arith.addf %105, %106 : vector<2x64xf32>
    %cst_48 = arith.constant dense<0.000000e+00> : vector<2x64xf32>
    %108 = tpu.matmul %104, %64, %cst_48 {dimension_numbers = #tpu.dot_dimension_numbers<[1], [0], [0], [1], [0, 0, 1, 1], [], []>} : vector<2x64xf32>, vector<64x64xf32>, vector<2x64xf32> -> vector<2x64xf32>
    %109 = vector.broadcast %67 : vector<1x64xf32> to vector<2x64xf32>
    %110 = arith.addf %108, %109 : vector<2x64xf32>
    %cst_49 = arith.constant dense<0.000000e+00> : vector<2x64xf32>
    %111 = tpu.matmul %104, %65, %cst_49 {dimension_numbers = #tpu.dot_dimension_numbers<[1], [0], [0], [1], [0, 0, 1, 1], [], []>} : vector<2x64xf32>, vector<64x64xf32>, vector<2x64xf32> -> vector<2x64xf32>
    %112 = vector.broadcast %68 : vector<1x64xf32> to vector<2x64xf32>
    %113 = arith.addf %111, %112 : vector<2x64xf32>
    %114 = vector.extract_strided_slice %58 {offsets = [0, 1, 0], sizes = [2, 1, 64], strides = [1, 1, 1]} : vector<2x8x64xf32> to vector<2x1x64xf32>
    %115 = vector.shape_cast %114 : vector<2x1x64xf32> to vector<2x64xf32>
    %116 = arith.addf %115, %107 : vector<2x64xf32>
    %117 = arith.negf %116 : vector<2x64xf32>
    %118 = math.exp %117 : vector<2x64xf32>
    %cst_50 = arith.constant 1.000000e+00 : f32
    %119 = vector.broadcast %cst_50 : f32 to vector<2x64xf32>
    %120 = arith.addf %119, %118 : vector<2x64xf32>
    %121 = arith.divf %119, %120 : vector<2x64xf32>
    %122 = vector.extract_strided_slice %60 {offsets = [0, 1, 0], sizes = [2, 1, 64], strides = [1, 1, 1]} : vector<2x8x64xf32> to vector<2x1x64xf32>
    %123 = vector.shape_cast %122 : vector<2x1x64xf32> to vector<2x64xf32>
    %124 = arith.addf %123, %110 : vector<2x64xf32>
    %125 = arith.negf %124 : vector<2x64xf32>
    %126 = math.exp %125 : vector<2x64xf32>
    %cst_51 = arith.constant 1.000000e+00 : f32
    %127 = vector.broadcast %cst_51 : f32 to vector<2x64xf32>
    %128 = arith.addf %127, %126 : vector<2x64xf32>
    %129 = arith.divf %127, %128 : vector<2x64xf32>
    %130 = vector.extract_strided_slice %62 {offsets = [0, 1, 0], sizes = [2, 1, 64], strides = [1, 1, 1]} : vector<2x8x64xf32> to vector<2x1x64xf32>
    %131 = vector.shape_cast %130 : vector<2x1x64xf32> to vector<2x64xf32>
    %132 = arith.mulf %121, %113 : vector<2x64xf32>
    %133 = arith.addf %131, %132 : vector<2x64xf32>
    %134 = math.tanh %133 : vector<2x64xf32>
    %cst_52 = arith.constant 1.000000e+00 : f32
    %135 = vector.broadcast %cst_52 : f32 to vector<2x64xf32>
    %136 = arith.subf %135, %129 : vector<2x64xf32>
    %137 = arith.mulf %136, %134 : vector<2x64xf32>
    %138 = arith.mulf %129, %104 : vector<2x64xf32>
    %139 = arith.addf %137, %138 : vector<2x64xf32>
    %cst_53 = arith.constant dense<0.000000e+00> : vector<2x64xf32>
    %140 = tpu.matmul %139, %63, %cst_53 {dimension_numbers = #tpu.dot_dimension_numbers<[1], [0], [0], [1], [0, 0, 1, 1], [], []>} : vector<2x64xf32>, vector<64x64xf32>, vector<2x64xf32> -> vector<2x64xf32>
    %141 = vector.broadcast %66 : vector<1x64xf32> to vector<2x64xf32>
    %142 = arith.addf %140, %141 : vector<2x64xf32>
    %cst_54 = arith.constant dense<0.000000e+00> : vector<2x64xf32>
    %143 = tpu.matmul %139, %64, %cst_54 {dimension_numbers = #tpu.dot_dimension_numbers<[1], [0], [0], [1], [0, 0, 1, 1], [], []>} : vector<2x64xf32>, vector<64x64xf32>, vector<2x64xf32> -> vector<2x64xf32>
    %144 = vector.broadcast %67 : vector<1x64xf32> to vector<2x64xf32>
    %145 = arith.addf %143, %144 : vector<2x64xf32>
    %cst_55 = arith.constant dense<0.000000e+00> : vector<2x64xf32>
    %146 = tpu.matmul %139, %65, %cst_55 {dimension_numbers = #tpu.dot_dimension_numbers<[1], [0], [0], [1], [0, 0, 1, 1], [], []>} : vector<2x64xf32>, vector<64x64xf32>, vector<2x64xf32> -> vector<2x64xf32>
    %147 = vector.broadcast %68 : vector<1x64xf32> to vector<2x64xf32>
    %148 = arith.addf %146, %147 : vector<2x64xf32>
    %149 = vector.extract_strided_slice %58 {offsets = [0, 2, 0], sizes = [2, 1, 64], strides = [1, 1, 1]} : vector<2x8x64xf32> to vector<2x1x64xf32>
    %150 = vector.shape_cast %149 : vector<2x1x64xf32> to vector<2x64xf32>
    %151 = arith.addf %150, %142 : vector<2x64xf32>
    %152 = arith.negf %151 : vector<2x64xf32>
    %153 = math.exp %152 : vector<2x64xf32>
    %cst_56 = arith.constant 1.000000e+00 : f32
    %154 = vector.broadcast %cst_56 : f32 to vector<2x64xf32>
    %155 = arith.addf %154, %153 : vector<2x64xf32>
    %156 = arith.divf %154, %155 : vector<2x64xf32>
    %157 = vector.extract_strided_slice %60 {offsets = [0, 2, 0], sizes = [2, 1, 64], strides = [1, 1, 1]} : vector<2x8x64xf32> to vector<2x1x64xf32>
    %158 = vector.shape_cast %157 : vector<2x1x64xf32> to vector<2x64xf32>
    %159 = arith.addf %158, %145 : vector<2x64xf32>
    %160 = arith.negf %159 : vector<2x64xf32>
    %161 = math.exp %160 : vector<2x64xf32>
    %cst_57 = arith.constant 1.000000e+00 : f32
    %162 = vector.broadcast %cst_57 : f32 to vector<2x64xf32>
    %163 = arith.addf %162, %161 : vector<2x64xf32>
    %164 = arith.divf %162, %163 : vector<2x64xf32>
    %165 = vector.extract_strided_slice %62 {offsets = [0, 2, 0], sizes = [2, 1, 64], strides = [1, 1, 1]} : vector<2x8x64xf32> to vector<2x1x64xf32>
    %166 = vector.shape_cast %165 : vector<2x1x64xf32> to vector<2x64xf32>
    %167 = arith.mulf %156, %148 : vector<2x64xf32>
    %168 = arith.addf %166, %167 : vector<2x64xf32>
    %169 = math.tanh %168 : vector<2x64xf32>
    %cst_58 = arith.constant 1.000000e+00 : f32
    %170 = vector.broadcast %cst_58 : f32 to vector<2x64xf32>
    %171 = arith.subf %170, %164 : vector<2x64xf32>
    %172 = arith.mulf %171, %169 : vector<2x64xf32>
    %173 = arith.mulf %164, %139 : vector<2x64xf32>
    %174 = arith.addf %172, %173 : vector<2x64xf32>
    %cst_59 = arith.constant dense<0.000000e+00> : vector<2x64xf32>
    %175 = tpu.matmul %174, %63, %cst_59 {dimension_numbers = #tpu.dot_dimension_numbers<[1], [0], [0], [1], [0, 0, 1, 1], [], []>} : vector<2x64xf32>, vector<64x64xf32>, vector<2x64xf32> -> vector<2x64xf32>
    %176 = vector.broadcast %66 : vector<1x64xf32> to vector<2x64xf32>
    %177 = arith.addf %175, %176 : vector<2x64xf32>
    %cst_60 = arith.constant dense<0.000000e+00> : vector<2x64xf32>
    %178 = tpu.matmul %174, %64, %cst_60 {dimension_numbers = #tpu.dot_dimension_numbers<[1], [0], [0], [1], [0, 0, 1, 1], [], []>} : vector<2x64xf32>, vector<64x64xf32>, vector<2x64xf32> -> vector<2x64xf32>
    %179 = vector.broadcast %67 : vector<1x64xf32> to vector<2x64xf32>
    %180 = arith.addf %178, %179 : vector<2x64xf32>
    %cst_61 = arith.constant dense<0.000000e+00> : vector<2x64xf32>
    %181 = tpu.matmul %174, %65, %cst_61 {dimension_numbers = #tpu.dot_dimension_numbers<[1], [0], [0], [1], [0, 0, 1, 1], [], []>} : vector<2x64xf32>, vector<64x64xf32>, vector<2x64xf32> -> vector<2x64xf32>
    %182 = vector.broadcast %68 : vector<1x64xf32> to vector<2x64xf32>
    %183 = arith.addf %181, %182 : vector<2x64xf32>
    %184 = vector.extract_strided_slice %58 {offsets = [0, 3, 0], sizes = [2, 1, 64], strides = [1, 1, 1]} : vector<2x8x64xf32> to vector<2x1x64xf32>
    %185 = vector.shape_cast %184 : vector<2x1x64xf32> to vector<2x64xf32>
    %186 = arith.addf %185, %177 : vector<2x64xf32>
    %187 = arith.negf %186 : vector<2x64xf32>
    %188 = math.exp %187 : vector<2x64xf32>
    %cst_62 = arith.constant 1.000000e+00 : f32
    %189 = vector.broadcast %cst_62 : f32 to vector<2x64xf32>
    %190 = arith.addf %189, %188 : vector<2x64xf32>
    %191 = arith.divf %189, %190 : vector<2x64xf32>
    %192 = vector.extract_strided_slice %60 {offsets = [0, 3, 0], sizes = [2, 1, 64], strides = [1, 1, 1]} : vector<2x8x64xf32> to vector<2x1x64xf32>
    %193 = vector.shape_cast %192 : vector<2x1x64xf32> to vector<2x64xf32>
    %194 = arith.addf %193, %180 : vector<2x64xf32>
    %195 = arith.negf %194 : vector<2x64xf32>
    %196 = math.exp %195 : vector<2x64xf32>
    %cst_63 = arith.constant 1.000000e+00 : f32
    %197 = vector.broadcast %cst_63 : f32 to vector<2x64xf32>
    %198 = arith.addf %197, %196 : vector<2x64xf32>
    %199 = arith.divf %197, %198 : vector<2x64xf32>
    %200 = vector.extract_strided_slice %62 {offsets = [0, 3, 0], sizes = [2, 1, 64], strides = [1, 1, 1]} : vector<2x8x64xf32> to vector<2x1x64xf32>
    %201 = vector.shape_cast %200 : vector<2x1x64xf32> to vector<2x64xf32>
    %202 = arith.mulf %191, %183 : vector<2x64xf32>
    %203 = arith.addf %201, %202 : vector<2x64xf32>
    %204 = math.tanh %203 : vector<2x64xf32>
    %cst_64 = arith.constant 1.000000e+00 : f32
    %205 = vector.broadcast %cst_64 : f32 to vector<2x64xf32>
    %206 = arith.subf %205, %199 : vector<2x64xf32>
    %207 = arith.mulf %206, %204 : vector<2x64xf32>
    %208 = arith.mulf %199, %174 : vector<2x64xf32>
    %209 = arith.addf %207, %208 : vector<2x64xf32>
    %cst_65 = arith.constant dense<0.000000e+00> : vector<2x64xf32>
    %210 = tpu.matmul %209, %63, %cst_65 {dimension_numbers = #tpu.dot_dimension_numbers<[1], [0], [0], [1], [0, 0, 1, 1], [], []>} : vector<2x64xf32>, vector<64x64xf32>, vector<2x64xf32> -> vector<2x64xf32>
    %211 = vector.broadcast %66 : vector<1x64xf32> to vector<2x64xf32>
    %212 = arith.addf %210, %211 : vector<2x64xf32>
    %cst_66 = arith.constant dense<0.000000e+00> : vector<2x64xf32>
    %213 = tpu.matmul %209, %64, %cst_66 {dimension_numbers = #tpu.dot_dimension_numbers<[1], [0], [0], [1], [0, 0, 1, 1], [], []>} : vector<2x64xf32>, vector<64x64xf32>, vector<2x64xf32> -> vector<2x64xf32>
    %214 = vector.broadcast %67 : vector<1x64xf32> to vector<2x64xf32>
    %215 = arith.addf %213, %214 : vector<2x64xf32>
    %cst_67 = arith.constant dense<0.000000e+00> : vector<2x64xf32>
    %216 = tpu.matmul %209, %65, %cst_67 {dimension_numbers = #tpu.dot_dimension_numbers<[1], [0], [0], [1], [0, 0, 1, 1], [], []>} : vector<2x64xf32>, vector<64x64xf32>, vector<2x64xf32> -> vector<2x64xf32>
    %217 = vector.broadcast %68 : vector<1x64xf32> to vector<2x64xf32>
    %218 = arith.addf %216, %217 : vector<2x64xf32>
    %219 = vector.extract_strided_slice %58 {offsets = [0, 4, 0], sizes = [2, 1, 64], strides = [1, 1, 1]} : vector<2x8x64xf32> to vector<2x1x64xf32>
    %220 = vector.shape_cast %219 : vector<2x1x64xf32> to vector<2x64xf32>
    %221 = arith.addf %220, %212 : vector<2x64xf32>
    %222 = arith.negf %221 : vector<2x64xf32>
    %223 = math.exp %222 : vector<2x64xf32>
    %cst_68 = arith.constant 1.000000e+00 : f32
    %224 = vector.broadcast %cst_68 : f32 to vector<2x64xf32>
    %225 = arith.addf %224, %223 : vector<2x64xf32>
    %226 = arith.divf %224, %225 : vector<2x64xf32>
    %227 = vector.extract_strided_slice %60 {offsets = [0, 4, 0], sizes = [2, 1, 64], strides = [1, 1, 1]} : vector<2x8x64xf32> to vector<2x1x64xf32>
    %228 = vector.shape_cast %227 : vector<2x1x64xf32> to vector<2x64xf32>
    %229 = arith.addf %228, %215 : vector<2x64xf32>
    %230 = arith.negf %229 : vector<2x64xf32>
    %231 = math.exp %230 : vector<2x64xf32>
    %cst_69 = arith.constant 1.000000e+00 : f32
    %232 = vector.broadcast %cst_69 : f32 to vector<2x64xf32>
    %233 = arith.addf %232, %231 : vector<2x64xf32>
    %234 = arith.divf %232, %233 : vector<2x64xf32>
    %235 = vector.extract_strided_slice %62 {offsets = [0, 4, 0], sizes = [2, 1, 64], strides = [1, 1, 1]} : vector<2x8x64xf32> to vector<2x1x64xf32>
    %236 = vector.shape_cast %235 : vector<2x1x64xf32> to vector<2x64xf32>
    %237 = arith.mulf %226, %218 : vector<2x64xf32>
    %238 = arith.addf %236, %237 : vector<2x64xf32>
    %239 = math.tanh %238 : vector<2x64xf32>
    %cst_70 = arith.constant 1.000000e+00 : f32
    %240 = vector.broadcast %cst_70 : f32 to vector<2x64xf32>
    %241 = arith.subf %240, %234 : vector<2x64xf32>
    %242 = arith.mulf %241, %239 : vector<2x64xf32>
    %243 = arith.mulf %234, %209 : vector<2x64xf32>
    %244 = arith.addf %242, %243 : vector<2x64xf32>
    %cst_71 = arith.constant dense<0.000000e+00> : vector<2x64xf32>
    %245 = tpu.matmul %244, %63, %cst_71 {dimension_numbers = #tpu.dot_dimension_numbers<[1], [0], [0], [1], [0, 0, 1, 1], [], []>} : vector<2x64xf32>, vector<64x64xf32>, vector<2x64xf32> -> vector<2x64xf32>
    %246 = vector.broadcast %66 : vector<1x64xf32> to vector<2x64xf32>
    %247 = arith.addf %245, %246 : vector<2x64xf32>
    %cst_72 = arith.constant dense<0.000000e+00> : vector<2x64xf32>
    %248 = tpu.matmul %244, %64, %cst_72 {dimension_numbers = #tpu.dot_dimension_numbers<[1], [0], [0], [1], [0, 0, 1, 1], [], []>} : vector<2x64xf32>, vector<64x64xf32>, vector<2x64xf32> -> vector<2x64xf32>
    %249 = vector.broadcast %67 : vector<1x64xf32> to vector<2x64xf32>
    %250 = arith.addf %248, %249 : vector<2x64xf32>
    %cst_73 = arith.constant dense<0.000000e+00> : vector<2x64xf32>
    %251 = tpu.matmul %244, %65, %cst_73 {dimension_numbers = #tpu.dot_dimension_numbers<[1], [0], [0], [1], [0, 0, 1, 1], [], []>} : vector<2x64xf32>, vector<64x64xf32>, vector<2x64xf32> -> vector<2x64xf32>
    %252 = vector.broadcast %68 : vector<1x64xf32> to vector<2x64xf32>
    %253 = arith.addf %251, %252 : vector<2x64xf32>
    %254 = vector.extract_strided_slice %58 {offsets = [0, 5, 0], sizes = [2, 1, 64], strides = [1, 1, 1]} : vector<2x8x64xf32> to vector<2x1x64xf32>
    %255 = vector.shape_cast %254 : vector<2x1x64xf32> to vector<2x64xf32>
    %256 = arith.addf %255, %247 : vector<2x64xf32>
    %257 = arith.negf %256 : vector<2x64xf32>
    %258 = math.exp %257 : vector<2x64xf32>
    %cst_74 = arith.constant 1.000000e+00 : f32
    %259 = vector.broadcast %cst_74 : f32 to vector<2x64xf32>
    %260 = arith.addf %259, %258 : vector<2x64xf32>
    %261 = arith.divf %259, %260 : vector<2x64xf32>
    %262 = vector.extract_strided_slice %60 {offsets = [0, 5, 0], sizes = [2, 1, 64], strides = [1, 1, 1]} : vector<2x8x64xf32> to vector<2x1x64xf32>
    %263 = vector.shape_cast %262 : vector<2x1x64xf32> to vector<2x64xf32>
    %264 = arith.addf %263, %250 : vector<2x64xf32>
    %265 = arith.negf %264 : vector<2x64xf32>
    %266 = math.exp %265 : vector<2x64xf32>
    %cst_75 = arith.constant 1.000000e+00 : f32
    %267 = vector.broadcast %cst_75 : f32 to vector<2x64xf32>
    %268 = arith.addf %267, %266 : vector<2x64xf32>
    %269 = arith.divf %267, %268 : vector<2x64xf32>
    %270 = vector.extract_strided_slice %62 {offsets = [0, 5, 0], sizes = [2, 1, 64], strides = [1, 1, 1]} : vector<2x8x64xf32> to vector<2x1x64xf32>
    %271 = vector.shape_cast %270 : vector<2x1x64xf32> to vector<2x64xf32>
    %272 = arith.mulf %261, %253 : vector<2x64xf32>
    %273 = arith.addf %271, %272 : vector<2x64xf32>
    %274 = math.tanh %273 : vector<2x64xf32>
    %cst_76 = arith.constant 1.000000e+00 : f32
    %275 = vector.broadcast %cst_76 : f32 to vector<2x64xf32>
    %276 = arith.subf %275, %269 : vector<2x64xf32>
    %277 = arith.mulf %276, %274 : vector<2x64xf32>
    %278 = arith.mulf %269, %244 : vector<2x64xf32>
    %279 = arith.addf %277, %278 : vector<2x64xf32>
    %cst_77 = arith.constant dense<0.000000e+00> : vector<2x64xf32>
    %280 = tpu.matmul %279, %63, %cst_77 {dimension_numbers = #tpu.dot_dimension_numbers<[1], [0], [0], [1], [0, 0, 1, 1], [], []>} : vector<2x64xf32>, vector<64x64xf32>, vector<2x64xf32> -> vector<2x64xf32>
    %281 = vector.broadcast %66 : vector<1x64xf32> to vector<2x64xf32>
    %282 = arith.addf %280, %281 : vector<2x64xf32>
    %cst_78 = arith.constant dense<0.000000e+00> : vector<2x64xf32>
    %283 = tpu.matmul %279, %64, %cst_78 {dimension_numbers = #tpu.dot_dimension_numbers<[1], [0], [0], [1], [0, 0, 1, 1], [], []>} : vector<2x64xf32>, vector<64x64xf32>, vector<2x64xf32> -> vector<2x64xf32>
    %284 = vector.broadcast %67 : vector<1x64xf32> to vector<2x64xf32>
    %285 = arith.addf %283, %284 : vector<2x64xf32>
    %cst_79 = arith.constant dense<0.000000e+00> : vector<2x64xf32>
    %286 = tpu.matmul %279, %65, %cst_79 {dimension_numbers = #tpu.dot_dimension_numbers<[1], [0], [0], [1], [0, 0, 1, 1], [], []>} : vector<2x64xf32>, vector<64x64xf32>, vector<2x64xf32> -> vector<2x64xf32>
    %287 = vector.broadcast %68 : vector<1x64xf32> to vector<2x64xf32>
    %288 = arith.addf %286, %287 : vector<2x64xf32>
    %289 = vector.extract_strided_slice %58 {offsets = [0, 6, 0], sizes = [2, 1, 64], strides = [1, 1, 1]} : vector<2x8x64xf32> to vector<2x1x64xf32>
    %290 = vector.shape_cast %289 : vector<2x1x64xf32> to vector<2x64xf32>
    %291 = arith.addf %290, %282 : vector<2x64xf32>
    %292 = arith.negf %291 : vector<2x64xf32>
    %293 = math.exp %292 : vector<2x64xf32>
    %cst_80 = arith.constant 1.000000e+00 : f32
    %294 = vector.broadcast %cst_80 : f32 to vector<2x64xf32>
    %295 = arith.addf %294, %293 : vector<2x64xf32>
    %296 = arith.divf %294, %295 : vector<2x64xf32>
    %297 = vector.extract_strided_slice %60 {offsets = [0, 6, 0], sizes = [2, 1, 64], strides = [1, 1, 1]} : vector<2x8x64xf32> to vector<2x1x64xf32>
    %298 = vector.shape_cast %297 : vector<2x1x64xf32> to vector<2x64xf32>
    %299 = arith.addf %298, %285 : vector<2x64xf32>
    %300 = arith.negf %299 : vector<2x64xf32>
    %301 = math.exp %300 : vector<2x64xf32>
    %cst_81 = arith.constant 1.000000e+00 : f32
    %302 = vector.broadcast %cst_81 : f32 to vector<2x64xf32>
    %303 = arith.addf %302, %301 : vector<2x64xf32>
    %304 = arith.divf %302, %303 : vector<2x64xf32>
    %305 = vector.extract_strided_slice %62 {offsets = [0, 6, 0], sizes = [2, 1, 64], strides = [1, 1, 1]} : vector<2x8x64xf32> to vector<2x1x64xf32>
    %306 = vector.shape_cast %305 : vector<2x1x64xf32> to vector<2x64xf32>
    %307 = arith.mulf %296, %288 : vector<2x64xf32>
    %308 = arith.addf %306, %307 : vector<2x64xf32>
    %309 = math.tanh %308 : vector<2x64xf32>
    %cst_82 = arith.constant 1.000000e+00 : f32
    %310 = vector.broadcast %cst_82 : f32 to vector<2x64xf32>
    %311 = arith.subf %310, %304 : vector<2x64xf32>
    %312 = arith.mulf %311, %309 : vector<2x64xf32>
    %313 = arith.mulf %304, %279 : vector<2x64xf32>
    %314 = arith.addf %312, %313 : vector<2x64xf32>
    %cst_83 = arith.constant dense<0.000000e+00> : vector<2x64xf32>
    %315 = tpu.matmul %314, %63, %cst_83 {dimension_numbers = #tpu.dot_dimension_numbers<[1], [0], [0], [1], [0, 0, 1, 1], [], []>} : vector<2x64xf32>, vector<64x64xf32>, vector<2x64xf32> -> vector<2x64xf32>
    %316 = vector.broadcast %66 : vector<1x64xf32> to vector<2x64xf32>
    %317 = arith.addf %315, %316 : vector<2x64xf32>
    %cst_84 = arith.constant dense<0.000000e+00> : vector<2x64xf32>
    %318 = tpu.matmul %314, %64, %cst_84 {dimension_numbers = #tpu.dot_dimension_numbers<[1], [0], [0], [1], [0, 0, 1, 1], [], []>} : vector<2x64xf32>, vector<64x64xf32>, vector<2x64xf32> -> vector<2x64xf32>
    %319 = vector.broadcast %67 : vector<1x64xf32> to vector<2x64xf32>
    %320 = arith.addf %318, %319 : vector<2x64xf32>
    %cst_85 = arith.constant dense<0.000000e+00> : vector<2x64xf32>
    %321 = tpu.matmul %314, %65, %cst_85 {dimension_numbers = #tpu.dot_dimension_numbers<[1], [0], [0], [1], [0, 0, 1, 1], [], []>} : vector<2x64xf32>, vector<64x64xf32>, vector<2x64xf32> -> vector<2x64xf32>
    %322 = vector.broadcast %68 : vector<1x64xf32> to vector<2x64xf32>
    %323 = arith.addf %321, %322 : vector<2x64xf32>
    %324 = vector.extract_strided_slice %58 {offsets = [0, 7, 0], sizes = [2, 1, 64], strides = [1, 1, 1]} : vector<2x8x64xf32> to vector<2x1x64xf32>
    %325 = vector.shape_cast %324 : vector<2x1x64xf32> to vector<2x64xf32>
    %326 = arith.addf %325, %317 : vector<2x64xf32>
    %327 = arith.negf %326 : vector<2x64xf32>
    %328 = math.exp %327 : vector<2x64xf32>
    %cst_86 = arith.constant 1.000000e+00 : f32
    %329 = vector.broadcast %cst_86 : f32 to vector<2x64xf32>
    %330 = arith.addf %329, %328 : vector<2x64xf32>
    %331 = arith.divf %329, %330 : vector<2x64xf32>
    %332 = vector.extract_strided_slice %60 {offsets = [0, 7, 0], sizes = [2, 1, 64], strides = [1, 1, 1]} : vector<2x8x64xf32> to vector<2x1x64xf32>
    %333 = vector.shape_cast %332 : vector<2x1x64xf32> to vector<2x64xf32>
    %334 = arith.addf %333, %320 : vector<2x64xf32>
    %335 = arith.negf %334 : vector<2x64xf32>
    %336 = math.exp %335 : vector<2x64xf32>
    %cst_87 = arith.constant 1.000000e+00 : f32
    %337 = vector.broadcast %cst_87 : f32 to vector<2x64xf32>
    %338 = arith.addf %337, %336 : vector<2x64xf32>
    %339 = arith.divf %337, %338 : vector<2x64xf32>
    %340 = vector.extract_strided_slice %62 {offsets = [0, 7, 0], sizes = [2, 1, 64], strides = [1, 1, 1]} : vector<2x8x64xf32> to vector<2x1x64xf32>
    %341 = vector.shape_cast %340 : vector<2x1x64xf32> to vector<2x64xf32>
    %342 = arith.mulf %331, %323 : vector<2x64xf32>
    %343 = arith.addf %341, %342 : vector<2x64xf32>
    %344 = math.tanh %343 : vector<2x64xf32>
    %cst_88 = arith.constant 1.000000e+00 : f32
    %345 = vector.broadcast %cst_88 : f32 to vector<2x64xf32>
    %346 = arith.subf %345, %339 : vector<2x64xf32>
    %347 = arith.mulf %346, %344 : vector<2x64xf32>
    %348 = arith.mulf %339, %314 : vector<2x64xf32>
    %349 = arith.addf %347, %348 : vector<2x64xf32>
    %c0_89 = arith.constant 0 : index
    %c0_90 = arith.constant 0 : index
    %350 = vector.load %arg13[%c0_89, %c0_90] : memref<64x64xf32, #tpu.memory_space<vmem>>, vector<64x64xf32>
    %cst_91 = arith.constant dense<0.000000e+00> : vector<2x64xf32>
    %351 = tpu.matmul %349, %350, %cst_91 {dimension_numbers = #tpu.dot_dimension_numbers<[1], [0], [0], [1], [0, 0, 1, 1], [], []>} : vector<2x64xf32>, vector<64x64xf32>, vector<2x64xf32> -> vector<2x64xf32>
    %c0_92 = arith.constant 0 : index
    %c0_93 = arith.constant 0 : index
    %352 = vector.load %arg14[%c0_92, %c0_93] : memref<1x64xf32, #tpu.memory_space<vmem>>, vector<1x64xf32>
    %353 = vector.broadcast %352 : vector<1x64xf32> to vector<2x64xf32>
    %354 = arith.addf %351, %353 : vector<2x64xf32>
    %cst_94 = arith.constant 0.000000e+00 : f32
    %355 = vector.broadcast %cst_94 : f32 to vector<2x64xf32>
    %356 = arith.maximumf %354, %355 : vector<2x64xf32>
    %357 = vector.extract_strided_slice %356 {offsets = [0, 0], sizes = [2, 32], strides = [1, 1]} : vector<2x64xf32> to vector<2x32xf32>
    %cst_95 = arith.constant dense<0.000000e+00> : vector<2xf32>
    %358 = vector.multi_reduction <add>, %357, %cst_95 [1] : vector<2x32xf32> to vector<2xf32>
    %359 = vector.shape_cast %358 : vector<2xf32> to vector<2x1xf32>
    %cst_96 = arith.constant 3.200000e+01 : f32
    %360 = vector.broadcast %cst_96 : f32 to vector<2x1xf32>
    %361 = arith.divf %359, %360 : vector<2x1xf32>
    %362 = vector.broadcast %361 : vector<2x1xf32> to vector<2x32xf32>
    %363 = arith.subf %357, %362 : vector<2x32xf32>
    %364 = arith.mulf %363, %363 : vector<2x32xf32>
    %cst_97 = arith.constant dense<0.000000e+00> : vector<2xf32>
    %365 = vector.multi_reduction <add>, %364, %cst_97 [1] : vector<2x32xf32> to vector<2xf32>
    %366 = vector.shape_cast %365 : vector<2xf32> to vector<2x1xf32>
    %cst_98 = arith.constant 3.200000e+01 : f32
    %367 = vector.broadcast %cst_98 : f32 to vector<2x1xf32>
    %368 = arith.divf %366, %367 : vector<2x1xf32>
    %369 = vector.broadcast %361 : vector<2x1xf32> to vector<2x32xf32>
    %370 = arith.subf %357, %369 : vector<2x32xf32>
    %cst_99 = arith.constant 9.99999974E-6 : f32
    %371 = vector.broadcast %cst_99 : f32 to vector<2x1xf32>
    %372 = arith.addf %368, %371 : vector<2x1xf32>
    %373 = math.rsqrt %372 : vector<2x1xf32>
    %374 = vector.broadcast %373 : vector<2x1xf32> to vector<2x32xf32>
    %375 = arith.mulf %370, %374 : vector<2x32xf32>
    %376 = vector.extract_strided_slice %356 {offsets = [0, 32], sizes = [2, 32], strides = [1, 1]} : vector<2x64xf32> to vector<2x32xf32>
    %cst_100 = arith.constant dense<0.000000e+00> : vector<2xf32>
    %377 = vector.multi_reduction <add>, %376, %cst_100 [1] : vector<2x32xf32> to vector<2xf32>
    %378 = vector.shape_cast %377 : vector<2xf32> to vector<2x1xf32>
    %cst_101 = arith.constant 3.200000e+01 : f32
    %379 = vector.broadcast %cst_101 : f32 to vector<2x1xf32>
    %380 = arith.divf %378, %379 : vector<2x1xf32>
    %381 = vector.broadcast %380 : vector<2x1xf32> to vector<2x32xf32>
    %382 = arith.subf %376, %381 : vector<2x32xf32>
    %383 = arith.mulf %382, %382 : vector<2x32xf32>
    %cst_102 = arith.constant dense<0.000000e+00> : vector<2xf32>
    %384 = vector.multi_reduction <add>, %383, %cst_102 [1] : vector<2x32xf32> to vector<2xf32>
    %385 = vector.shape_cast %384 : vector<2xf32> to vector<2x1xf32>
    %cst_103 = arith.constant 3.200000e+01 : f32
    %386 = vector.broadcast %cst_103 : f32 to vector<2x1xf32>
    %387 = arith.divf %385, %386 : vector<2x1xf32>
    %388 = vector.broadcast %380 : vector<2x1xf32> to vector<2x32xf32>
    %389 = arith.subf %376, %388 : vector<2x32xf32>
    %cst_104 = arith.constant 9.99999974E-6 : f32
    %390 = vector.broadcast %cst_104 : f32 to vector<2x1xf32>
    %391 = arith.addf %387, %390 : vector<2x1xf32>
    %392 = math.rsqrt %391 : vector<2x1xf32>
    %393 = vector.broadcast %392 : vector<2x1xf32> to vector<2x32xf32>
    %394 = arith.mulf %389, %393 : vector<2x32xf32>
    %395 = tpu.concatenate %375, %394 in 1 : vector<2x32xf32>, vector<2x32xf32> -> vector<2x64xf32>
    %c0_105 = arith.constant 0 : index
    %c0_106 = arith.constant 0 : index
    %396 = vector.load %arg15[%c0_105, %c0_106] : memref<64x128xf32, #tpu.memory_space<vmem>>, vector<64x128xf32>
    %cst_107 = arith.constant dense<0.000000e+00> : vector<2x128xf32>
    %397 = tpu.matmul %395, %396, %cst_107 {dimension_numbers = #tpu.dot_dimension_numbers<[1], [0], [0], [1], [0, 0, 1, 1], [], []>} : vector<2x64xf32>, vector<64x128xf32>, vector<2x128xf32> -> vector<2x128xf32>
    %c0_108 = arith.constant 0 : index
    %c0_109 = arith.constant 0 : index
    %398 = vector.load %arg16[%c0_108, %c0_109] : memref<1x128xf32, #tpu.memory_space<vmem>>, vector<1x128xf32>
    %399 = vector.broadcast %398 : vector<1x128xf32> to vector<2x128xf32>
    %400 = arith.addf %397, %399 : vector<2x128xf32>
    %c0_110 = arith.constant 0 : index
    %c0_111 = arith.constant 0 : index
    %401 = vector.load %arg17[%c0_110, %c0_111] : memref<2x128xf32, #tpu.memory_space<vmem>>, vector<2x128xf32>
    tpu.vector_store %arg17[%c0_110, %c0_111], %400 {strides = array<i32>} : memref<2x128xf32, #tpu.memory_space<vmem>>, vector<2x128xf32>,
    return
  }
}

</mosaic_0001>

<bundles_post_ra>
// kernel: gru_classifier_forward.1
= control target key start
LH: loop header
LB: loop body
LE: loop exit
PB: predicated region body
PF: predicated region fallthrough
CT: control target
= control target key end

     0   :  { %vm67_vm0 = vcmask 130048   ;;  %vm274_vm1 = vcmask 523264   ;;  %v4063_v54 = vmov 0.0   ;;  %vm4064_vm2 = vmmov 0   ;;  %s5288_s1 = inlined_call_operand.vmem [shape: f32[16,128], index: 1, kind: input, shape index: {}]   ;;  %s5289_s0 = inlined_call_operand.vmem [shape: f32[2,8,16], index: 0, kind: input, shape index: {}]   ;;  %s5290_s2 = inlined_call_operand.vmem [shape: f32[1,128], index: 2, kind: input, shape index: {}]   ;;  %s5291_s3 = inlined_call_operand.vmem [shape: f32[128,64], index: 3, kind: input, shape index: {}]   ;;  %s5292_s4 = inlined_call_operand.vmem [shape: f32[1,64], index: 4, kind: input, shape index: {}]   ;;  %s5293_s8 = inlined_call_operand.vmem [shape: f32[64,64], index: 8, kind: input, shape index: {}]   ;;  %s5294_s5 = inlined_call_operand.vmem [shape: f32[64,192], index: 5, kind: input, shape index: {}]   ;;  %s5295_s7 = inlined_call_operand.vmem [shape: f32[64,64], index: 7, kind: input, shape index: {}]   ;;  %s5296_s11 = inlined_call_operand.vmem [shape: f32[1,64], index: 11, kind: input, shape index: {}]   ;;  %s5297_s9 = inlined_call_operand.vmem [shape: f32[64,64], index: 9, kind: input, shape index: {}]   ;;  %s5298_s6 = inlined_call_operand.vmem [shape: f32[1,192], index: 6, kind: input, shape index: {}]   ;;  %s5299_s10 = inlined_call_operand.vmem [shape: f32[1,64], index: 10, kind: input, shape index: {}]   ;;  %s5300_s12 = inlined_call_operand.vmem [shape: f32[1,64], index: 12, kind: input, shape index: {}]   ;;  %s5301_s13 = inlined_call_operand.vmem [shape: f32[64,64], index: 13, kind: input, shape index: {}]   ;;  %s5302_s14 = inlined_call_operand.vmem [shape: f32[1,64], index: 14, kind: input, shape index: {}]   ;;  %s5303_s15 = inlined_call_operand.vmem [shape: f32[64,128], index: 15, kind: input, shape index: {}]   ;;  %s5304_s16 = inlined_call_operand.vmem [shape: f32[1,128], index: 16, kind: input, shape index: {}]   ;;  %s5305_s17 = inlined_call_operand.vmem [shape: f32[2,128], index: 17, kind: output, shape index: {}]  }
   0x1   :  { %5308 = sst [smem:[#allocation2_spill]] %s5288_s1  ;;  %v3002_v5 = vld [vmem:[%s5290_s2] ss:$0 sm:$0xff]  ;;  %v189_v11 = vld [vmem:[%s5291_s3 + $0x78] sm:$0xff]  ;;  %v188_v12 = vld [vmem:[%s5291_s3 + $0x70] sm:$0xff]  ;;  %vm740_vm3 = vcmask 1041409  }
   0x2   :  { %5309 = sst [smem:[#allocation3_spill]] %s5289_s0  ;;  %3331 = vmatprep.subr.mxu1 %v189_v11  ;;  %v187_v13 = vld [vmem:[%s5291_s3 + $0x68] sm:$0xff]  ;;  %v186_v14 = vld [vmem:[%s5291_s3 + $0x60] sm:$0xff]  ;;  %v185_v23 = vld [vmem:[%s5291_s3 + $0x58] sm:$0xff]  ;;  %vm2871_vm4 = vcmask 254976   ;;  %vm2907_vm5 = vcmask 261120  }
   0x3   :  { %s5310_s26 = sld [smem:[#allocation2_spill]]  ;;  %3332 = vmatpush3.msra.mxu1 %v189_v11  ;;  %v184_v24 = vld [vmem:[%s5291_s3 + $0x50] sm:$0xff]  ;;  %v183_v25 = vld [vmem:[%s5291_s3 + $0x48] sm:$0xff]  ;;  %v182_v26 = vld [vmem:[%s5291_s3 + $0x40] sm:$0xff] }
   0x4   :  { %s5311_s30 = sld [smem:[#allocation3_spill]]  ;;  %3333 = vmatprep.subr.mxu1 %v188_v12  ;;  %v181_v27 = vld [vmem:[%s5291_s3 + $0x38] sm:$0xff]  ;;  %v180_v28 = vld [vmem:[%s5291_s3 + $0x30] sm:$0xff]  ;;  %v179_v29 = vld [vmem:[%s5291_s3 + $0x28] sm:$0xff] }
   0x5   :  { %3334 = vmatpush3.msra.mxu1 %v188_v12  ;;  %v178_v30 = vld [vmem:[%s5291_s3 + $0x20] sm:$0xff]  ;;  %v177_v31 = vld [vmem:[%s5291_s3 + $0x18] sm:$0xff]  ;;  %v176_v32 = vld [vmem:[%s5291_s3 + $0x10] sm:$0xff] }
   0x6   :  { %3335 = vmatprep.subr.mxu1 %v187_v13  ;;  %v175_v33 = vld [vmem:[%s5291_s3 + $0x8] sm:$0xff]  ;;  %v174_v34 = vld [vmem:[%s5291_s3] sm:$0xff]  ;;  %v4229_v55 = vld [vmem:[%s5293_s8 + $0x38] sm:$0xff]  ;;  %s4066_s3 = smov 96  }
   0x7   :  { %3336 = vmatpush3.msra.mxu1 %v187_v13  ;;  %v3005_v45 = vld [vmem:[%s5292_s4] ss:$0 sm:$0xff]  ;;  %v4234_v56 = vld [vmem:[%s5293_s8 + $0x30] sm:$0xff]  ;;  %v4244_v57 = vld [vmem:[%s5293_s8 + $0x28] sm:$0xff] }
   0x8   :  { %3337 = vmatprep.subr.mxu1 %v186_v14  ;;  %v4251_v58 = vld [vmem:[%s5293_s8 + $0x20] sm:$0xff]  ;;  %v4258_v59 = vld [vmem:[%s5293_s8 + $0x18] sm:$0xff]  ;;  %v4265_v60 = vld [vmem:[%s5293_s8 + $0x10] sm:$0xff] }
   0x9   :  { %v59_v0 = vld [vmem:[%s5310_s26 + $0x8] sm:$0xff]  ;;  %v58_v1 = vld [vmem:[%s5310_s26] sm:$0xff]  ;;  %3338 = vmatpush3.msra.mxu1 %v186_v14  ;;  %v313_v13 = vld [vmem:[%s5294_s5 + $0x58] sm:$0xff] }
   0xa   :  { %v56_v2 = vld [vmem:[%s5311_s30] sm:$0xff]  ;;  %3324 = vmatprep.subr.mxu0 %v59_v0  ;;  %v57_v3 = vld [vmem:[%s5311_s30 + $0x8] sm:$0xff]  ;;  %3339 = vmatprep.subr.mxu1 %v185_v23  ;;  %v312_v14 = vld [vmem:[%s5294_s5 + $0x50] sm:$0xff]  ;;  %s4065_s30 = smov 64  }
   0xb   :  { %3328 = vmatprep.mubr.msk.f32.mxu0 %vm67_vm0, %v56_v2  ;;  %3325 = vmatpush3.msra.mxu0 %v59_v0  ;;  %v4272_v61 = vld [vmem:[%s5293_s8 + $0x8] sm:$0xff]  ;;  %v4279_v62 = vld [vmem:[%s5293_s8] sm:$0xff] }
   0xc   :  { %3326 = vmatprep.subr.mxu0 %v58_v1  ;;  %3340 = vmatpush3.msra.mxu1 %v185_v23  ;;  %v315_v11 = vld [vmem:[%s5294_s5 + $0x68] sm:$0xff]  ;;  %v314_v12 = vld [vmem:[%s5294_s5 + $0x60] sm:$0xff] }
   0xd   :  { %3327 = vmatpush3.msra.mxu0 %v58_v1  ;;  %3341 = vmatprep.subr.mxu1 %v184_v24  ;;  %v303_v23 = vld [vmem:[%s5294_s5 + $0x8] sm:$0xff] }
   0xe   :  { %3329 = vmatmul.mubr.msk.f32.vlgmr.msra.gmra.mxu0 %vm67_vm0, %v57_v3  ;;  %3342 = vmatpush3.msra.mxu1 %v184_v24  ;;  %v302_v24 = vld [vmem:[%s5294_s5] sm:$0xff] }
   0xf   :  { %3343 = vmatprep.subr.mxu1 %v183_v25  ;;  %400 = vmatprep.mubr.f32.mxu0 %v4063_v54 }
  0x10   :  { %3344 = vmatpush3.msra.mxu1 %v183_v25  ;;  %v4350_v25 = vld [vmem:[%s5295_s7 + $0x38] sm:$0xff] }
  0x11   :  { %3345 = vmatprep.subr.mxu1 %v182_v26 }
  0x12   :  { %3346 = vmatpush3.msra.mxu1 %v182_v26  ;;  %v4357_v26 = vld [vmem:[%s5295_s7 + $0x30] sm:$0xff] }
  0x13   :  { %3347 = vmatprep.subr.mxu1 %v181_v27 }
  0x14   :  { %3348 = vmatpush3.msra.mxu1 %v181_v27  ;;  %v4363_v27 = vld [vmem:[%s5295_s7 + $0x28] sm:$0xff] }
  0x15   :  { %3349 = vmatprep.subr.mxu1 %v180_v28 }
  0x16   :  { %3350 = vmatpush3.msra.mxu1 %v180_v28  ;;  %v4370_v28 = vld [vmem:[%s5295_s7 + $0x20] sm:$0xff] }
  0x17   :  { %3351 = vmatprep.subr.mxu1 %v179_v29 }
  0x18   :  { %3352 = vmatpush3.msra.mxu1 %v179_v29  ;;  %v4377_v29 = vld [vmem:[%s5295_s7 + $0x18] sm:$0xff] }
  0x19   :  { %3353 = vmatprep.subr.mxu1 %v178_v30 }
  0x1a   :  { %3354 = vmatpush3.msra.mxu1 %v178_v30  ;;  %v4384_v30 = vld [vmem:[%s5295_s7 + $0x10] sm:$0xff] }
  0x1b   :  { %3355 = vmatprep.subr.mxu1 %v177_v31 }
  0x1c   :  { %3356 = vmatpush3.msra.mxu1 %v177_v31  ;;  %v4391_v31 = vld [vmem:[%s5295_s7 + $0x8] sm:$0xff] }
  0x1d   :  { %3357 = vmatprep.subr.mxu1 %v176_v32 }
  0x1e   :  { %3358 = vmatpush3.msra.mxu1 %v176_v32  ;;  %v4398_v32 = vld [vmem:[%s5295_s7] sm:$0xff] }
  0x1f   :  { %3359 = vmatprep.subr.mxu1 %v175_v33 }
  0x20   :  { %3360 = vmatpush3.msra.mxu1 %v175_v33  ;;  %v4406_v33 = vld [vmem:[%s5296_s11] ss:$0 sm:$0xff] }
  0x21   :  { %3361 = vmatprep.subr.mxu1 %v174_v34 }
  0x22   :  { %3362 = vmatpush3.msra.mxu1 %v174_v34 }
  0x23   :  { %3385 = vmatprep.subr.mxu1 %v4063_v54 }
  0xce   :  { %v3330_v4 = vpop.f32.mrf.mxu0 }
  0xcf   :  { %v146_v8 = vadd.f32 %v3330_v4, %v3002_v5 }
  0xd0   :  { %v140_v6 = vpop.f32.mrf.mxu0 }
  0xd1   :  { %v141_v7 = vadd.f32 %v3002_v5, %v140_v6  ;;  %v150_v10 = vmax.f32 %v146_v8, 0.0 }
  0xd3   :  { %v149_v9 = vmax.f32 %v141_v7, 0.0 }
  0xd5   :  { %151 = vadd.xlane.f32.xlu0 %v149_v9 }
  0xd9   :  { %153 = vadd.xlane.f32.xlu0 %v150_v10 }
 0x15e   :  { %v152_v15 = vpop.xlane.xlu0 %151 }
 0x15f   :  { %v156_v16 = vmul.f32 0.0078125, %v152_v15  ;;  %v311_v15 = vld [vmem:[%s5294_s5 + $0x48] sm:$0xff] }
 0x161   :  { %v158_v17 = vsub.f32 %v149_v9, %v156_v16  ;;  %v317_v9 = vld [vmem:[%s5294_s5 + $0x78] sm:$0xff]  ;;  %v310_v16 = vld [vmem:[%s5294_s5 + $0x40] sm:$0xff] }
 0x162   :  { %v154_v18 = vpop.xlane.xlu0 %153  ;;  %352 = vmatprep.subr.mxu0 %v317_v9 }
 0x163   :  { %v157_v19 = vmul.f32 0.0078125, %v154_v18  ;;  %v160_v20 = vmul.f32 %v158_v17, %v158_v17  ;;  %v308_v18 = vld [vmem:[%s5294_s5 + $0x30] sm:$0xff] }
 0x165   :  { %v159_v21 = vsub.f32 %v150_v10, %v157_v19  ;;  %162 = vadd.xlane.f32.xlu1 %v160_v20  ;;  %v316_v10 = vld [vmem:[%s5294_s5 + $0x70] sm:$0xff]  ;;  %v307_v19 = vld [vmem:[%s5294_s5 + $0x28] sm:$0xff]  ;;  %v306_v20 = vld [vmem:[%s5294_s5 + $0x20] sm:$0xff] }
 0x166   :  { %353 = vmatpush1.msra.mxu0 %v316_v10  ;;  %v4518_v10 = vld [vmem:[%s5299_s10] ss:$0 sm:$0xff] }
 0x167   :  { %v161_v22 = vmul.f32 %v159_v21, %v159_v21  ;;  %354 = vmatprep.subr.mxu0 %v315_v11 }
 0x168   :  { %355 = vmatpush1.msra.mxu0 %v314_v12 }
 0x169   :  { %164 = vadd.xlane.f32.xlu1 %v161_v22  ;;  %356 = vmatprep.subr.mxu0 %v313_v13  ;;  %v304_v22 = vld [vmem:[%s5294_s5 + $0x10] sm:$0xff] }
 0x16a   :  { %357 = vmatpush1.msra.mxu0 %v312_v14 }
 0x16b   :  { %358 = vmatprep.subr.mxu0 %v311_v15 }
 0x16c   :  { %359 = vmatpush1.msra.mxu0 %v310_v16 }
 0x1ee   :  { %v163_v35 = vpop.xlane.xlu1 %162 }
 0x1ef   :  { %v166_v36 = vmul.f32 0.0078125, %v163_v35 }
 0x1f1   :  { %v168_v37 = vadd.f32 1e-05, %v166_v36 }
 0x1f2   :  { %v165_v38 = vpop.xlane.xlu1 %164 }
 0x1f3   :  { %3864 = vrsqrt.f32 %v168_v37  ;;  %v167_v39 = vmul.f32 0.0078125, %v165_v38 }
 0x1f5   :  { %v169_v40 = vadd.f32 1e-05, %v167_v39 }
 0x1f7   :  { %3866 = vrsqrt.f32 %v169_v40 }
 0x200   :  { %v3865_v41 = vpop.eup %3864 }
 0x201   :  { %v172_v42 = vmul.f32 %v3865_v41, %v158_v17  ;;  %v309_v17 = vld [vmem:[%s5294_s5 + $0x38] sm:$0xff] }
 0x202   :  { %360 = vmatprep.subr.mxu0 %v309_v17 }
 0x203   :  { %3363 = vmatprep.mubr.f32.mxu1 %v172_v42  ;;  %361 = vmatpush1.msra.mxu0 %v308_v18 }
 0x204   :  { %v3867_v43 = vpop.eup %3866  ;;  %362 = vmatprep.subr.mxu0 %v307_v19 }
 0x205   :  { %v173_v44 = vmul.f32 %v3867_v43, %v159_v21  ;;  %v305_v21 = vld [vmem:[%s5294_s5 + $0x18] sm:$0xff]  ;;  %363 = vmatpush1.msra.mxu0 %v306_v20 }
 0x206   :  { %364 = vmatprep.subr.mxu0 %v305_v21 }
 0x207   :  { %3364 = vmatmul.mubr.f32.vlgmr.msra.gmra.mxu1 %v173_v44  ;;  %365 = vmatpush1.msra.mxu0 %v304_v22 }
 0x208   :  { %3401 = vmatprep.mubr.msk.f32.mxu1 %vm4064_vm2, %v4063_v54  ;;  %3386 = vmatpush3.msra.mxu1 %v4229_v55 }
 0x209   :  { %3387 = vmatprep.subr.mxu1 %v4063_v54  ;;  %366 = vmatprep.subr.mxu0 %v303_v23 }
 0x20a   :  { %3388 = vmatpush3.msra.mxu1 %v4234_v56  ;;  %367 = vmatpush1.msra.mxu0 %v302_v24 }
 0x20b   :  { %3389 = vmatprep.subr.mxu1 %v4063_v54  ;;  %3366 = vmatprep.subr.mxu0 %v4063_v54 }
 0x20c   :  { %3390 = vmatpush3.msra.mxu1 %v4244_v57 }
 0x20d   :  { %3391 = vmatprep.subr.mxu1 %v4063_v54 }
 0x20e   :  { %3392 = vmatpush3.msra.mxu1 %v4251_v58 }
 0x20f   :  { %3393 = vmatprep.subr.mxu1 %v4063_v54 }
 0x210   :  { %3394 = vmatpush3.msra.mxu1 %v4258_v59 }
 0x211   :  { %3395 = vmatprep.subr.mxu1 %v4063_v54 }
 0x212   :  { %3396 = vmatpush3.msra.mxu1 %v4265_v60 }
 0x213   :  { %3397 = vmatprep.subr.mxu1 %v4063_v54 }
 0x214   :  { %3398 = vmatpush3.msra.mxu1 %v4272_v61 }
 0x215   :  { %3399 = vmatprep.subr.mxu1 %v4063_v54 }
 0x216   :  { %3400 = vmatpush3.msra.mxu1 %v4279_v62 }
 0x217   :  { %3402 = vmatmul.mubr.f32.vlgmr.msra.gmra.mxu1 %v4063_v54  ;;  %3423 = vmatprep.subr.mxu1 %v4063_v54 }
 0x218   :  { %3439 = vmatprep.mubr.msk.f32.mxu1 %vm4064_vm2, %v4063_v54  ;;  %3424 = vmatpush3.msra.mxu1 %v4350_v25 }
 0x219   :  { %3425 = vmatprep.subr.mxu1 %v4063_v54 }
 0x21a   :  { %3426 = vmatpush3.msra.mxu1 %v4357_v26 }
 0x21b   :  { %3427 = vmatprep.subr.mxu1 %v4063_v54 }
 0x21c   :  { %3428 = vmatpush3.msra.mxu1 %v4363_v27 }
 0x21d   :  { %3429 = vmatprep.subr.mxu1 %v4063_v54 }
 0x21e   :  { %3430 = vmatpush3.msra.mxu1 %v4370_v28 }
 0x21f   :  { %3431 = vmatprep.subr.mxu1 %v4063_v54 }
 0x220   :  { %3432 = vmatpush3.msra.mxu1 %v4377_v29 }
 0x221   :  { %3433 = vmatprep.subr.mxu1 %v4063_v54 }
 0x222   :  { %3434 = vmatpush3.msra.mxu1 %v4384_v30 }
 0x223   :  { %3435 = vmatprep.subr.mxu1 %v4063_v54 }
 0x224   :  { %3436 = vmatpush3.msra.mxu1 %v4391_v31 }
 0x225   :  { %3437 = vmatprep.subr.mxu1 %v4063_v54 }
 0x226   :  { %3438 = vmatpush3.msra.mxu1 %v4398_v32 }
 0x227   :  { %3461 = vmatprep.subr.mxu1 %v4063_v54 }
 0x2c7   :  { %v3365_v46 = vpop.f32.mrf.mxu1 }
 0x2c8   :  { %v269_v47 = vadd.f32 %v3365_v46, %v3005_v45 }
 0x2c9   :  { %v263_v48 = vpop.f32.mrf.mxu1 }
 0x2ca   :  { %v273_v49 = vmax.f32 %v269_v47, 0.0  ;;  %v264_v50 = vadd.f32 %v3005_v45, %v263_v48  ;;  %v4435_v48 = vld [vmem:[%s5297_s9 + $0x38] sm:$0xff] }
 0x2cc   :  { %v272_v51 = vmax.f32 %v264_v50, 0.0  ;;  %v278_v52 = vsel %vm274_vm1, %v273_v49, 0.0  ;;  %v4452_v50 = vld [vmem:[%s5297_s9 + $0x28] sm:$0xff] }
 0x2cd   :  { %279 = vadd.xlane.f32.xlu1 %v278_v52  ;;  %v4466_v52 = vld [vmem:[%s5297_s9 + $0x18] sm:$0xff] }
 0x2ce   :  { %v275_v53 = vsel %vm274_vm1, %v272_v51, 0.0 }
 0x2cf   :  { %276 = vadd.xlane.f32.xlu0 %v275_v53  ;;  %v4473_v53 = vld [vmem:[%s5297_s9 + $0x10] sm:$0xff] }
 0x2d7   :  { %v591_v34 = vpop.f32.mrf.mxu1 }
 0x2d8   :  { %v592_v35 = vadd.f32 %v4406_v33, %v591_v34 }
 0x2d9   :  { %v3403_v36 = vpop.f32.mrf.mxu1 }
 0x2da   :  { %v690_v37 = vrot.slane %v592_v35, 1  ;;  %v4530_v36 = vld [vmem:[%s5300_s12] ss:$0 sm:$0xff] }
 0x356   :  { %v280_v63 = vpop.xlane.xlu1 %279 }
 0x357   :  { %v283_v0 = vmul.f32 0.015625, %v280_v63  ;;  %v4480_v63 = vld [vmem:[%s5297_s9 + $0x8] sm:$0xff] }
 0x358   :  { %v277_v1 = vpop.xlane.xlu0 %276 }
 0x359   :  { %v4288_v2 = vsub.f32 %v273_v49, %v283_v0  ;;  %v282_v3 = vmul.f32 0.015625, %v277_v1  ;;  %v4443_v49 = vld [vmem:[%s5297_s9 + $0x30] sm:$0xff]  ;;  %v4487_v0 = vld [vmem:[%s5297_s9] sm:$0xff]  ;;  %v320_v1 = vlaneseq }
 0x35b   :  { %v4290_v4 = vsub.f32 %v272_v51, %v282_v3  ;;  %v287_v5 = vmul.f32 %v4288_v2, %v4288_v2  ;;  %v4459_v51 = vld [vmem:[%s5297_s9 + $0x20] sm:$0xff]  ;;  %v321_v3 = vshrl.u32 %v320_v1, 7 }
 0x35d   :  { %v291_v6 = vsel %vm274_vm1, %v287_v5, 0.0  ;;  %v286_v7 = vmul.f32 %v4290_v4, %v4290_v4  ;;  %v322_v5 = vsub.s32 0, %v321_v3 }
 0x35e   :  { %292 = vadd.xlane.f32.xlu1 %v291_v6  ;;  %v318_v6 = vld [vmem:[%s5298_s6] sm:$0x3] }
 0x35f   :  { %v288_v8 = vsel %vm274_vm1, %v286_v7, 0.0 }
 0x360   :  { %289 = vadd.xlane.f32.xlu0 %v288_v8  ;;  %v323_v8 = vrot.slane %v318_v6, %v322_v5 }
 0x36f   :  { %691 = vrot.lane.b32.xlu1 %v592_v35, %s4065_s30 }
 0x376   :  { %693 = vrot.lane.b32.xlu0 %v690_v37, %s4065_s30 }
 0x3e7   :  { %v293_v38 = vpop.xlane.xlu1 %292 }
 0x3e8   :  { %v295_v39 = vmul.f32 0.015625, %v293_v38  ;;  %v326_v38 = vsub.s32 1, %v321_v3 }
 0x3e9   :  { %v290_v40 = vpop.xlane.xlu0 %289 }
 0x3ea   :  { %v294_v41 = vmul.f32 0.015625, %v290_v40  ;;  %v297_v42 = vadd.f32 1e-05, %v295_v39 }
 0x3ec   :  { %v296_v43 = vadd.f32 1e-05, %v294_v41  ;;  %v327_v41 = vrot.slane %v318_v6, %v326_v38 }
 0x3ed   :  { %v694_v5 = vpop.permute.xlu0 %693 }
 0x3ee   :  { %3868 = vrsqrt.f32 %v296_v43 }
 0x3ef   :  { %3870 = vrsqrt.f32 %v297_v42 }
 0x3fb   :  { %v3869_v44 = vpop.eup %3868 }
 0x3fc   :  { %v300_v45 = vmul.f32 %v3869_v44, %v4290_v4  ;;  %v3871_v46 = vpop.eup %3870 }
 0x3fd   :  { %v301_v47 = vmul.f32 %v3871_v46, %v4288_v2 }
 0x3fe   :  { %3006 = vmatmul.mubr.msk.f32.vlgmr.msra.gmra.mxu0 %vm274_vm1, %v300_v45 }
 0x3ff   :  { %3367 = vmatpush3.msra.mxu0 %v4350_v25  ;;  %406 = vmatprep.mubr.f32.mxu0 %v4063_v54 }
 0x400   :  { %3368 = vmatprep.subr.mxu0 %v4063_v54 }
 0x401   :  { %3369 = vmatpush3.msra.mxu0 %v4357_v26 }
 0x402   :  { %3370 = vmatprep.subr.mxu0 %v4063_v54  ;;  %3007 = vmatmul.mubr.msk.f32.gmra.mxu0 %vm274_vm1, %v301_v47 }
 0x403   :  { %3371 = vmatpush3.msra.mxu0 %v4363_v27  ;;  %3382 = vmatprep.mubr.msk.f32.mxu0 %vm4064_vm2, %v4063_v54 }
 0x404   :  { %3372 = vmatprep.subr.mxu0 %v4063_v54 }
 0x405   :  { %3373 = vmatpush3.msra.mxu0 %v4370_v28 }
 0x406   :  { %3374 = vmatprep.subr.mxu0 %v4063_v54 }
 0x407   :  { %3375 = vmatpush3.msra.mxu0 %v4377_v29 }
 0x408   :  { %3376 = vmatprep.subr.mxu0 %v4063_v54 }
 0x409   :  { %3377 = vmatpush3.msra.mxu0 %v4384_v30 }
 0x40a   :  { %3378 = vmatprep.subr.mxu0 %v4063_v54 }
 0x40b   :  { %3379 = vmatpush3.msra.mxu0 %v4391_v31 }
 0x40c   :  { %3380 = vmatprep.subr.mxu0 %v4063_v54 }
 0x40d   :  { %3381 = vmatpush3.msra.mxu0 %v4398_v32 }
 0x40e   :  { %3383 = vmatmul.mubr.f32.vlgmr.msra.gmra.mxu0 %v4063_v54  ;;  %3404 = vmatprep.subr.mxu0 %v4063_v54 }
 0x40f   :  { %3405 = vmatpush3.msra.mxu0 %v4435_v48  ;;  %3420 = vmatprep.mubr.msk.f32.mxu0 %vm4064_vm2, %v4063_v54 }
 0x410   :  { %3406 = vmatprep.subr.mxu0 %v4063_v54 }
 0x411   :  { %3407 = vmatpush3.msra.mxu0 %v4443_v49 }
 0x412   :  { %3408 = vmatprep.subr.mxu0 %v4063_v54 }
 0x413   :  { %3409 = vmatpush3.msra.mxu0 %v4452_v50 }
 0x414   :  { %3410 = vmatprep.subr.mxu0 %v4063_v54 }
 0x415   :  { %3411 = vmatpush3.msra.mxu0 %v4459_v51 }
 0x416   :  { %3412 = vmatprep.subr.mxu0 %v4063_v54 }
 0x417   :  { %3413 = vmatpush3.msra.mxu0 %v4466_v52 }
 0x418   :  { %3414 = vmatprep.subr.mxu0 %v4063_v54 }
 0x419   :  { %3415 = vmatpush3.msra.mxu0 %v4473_v53 }
 0x41a   :  { %3416 = vmatprep.subr.mxu0 %v4063_v54 }
 0x41b   :  { %3417 = vmatpush3.msra.mxu0 %v4480_v63 }
 0x41c   :  { %3418 = vmatprep.subr.mxu0 %v4063_v54 }
 0x41d   :  { %3419 = vmatpush3.msra.mxu0 %v4487_v0 }
 0x41e   :  { %3421 = vmatmul.mubr.f32.vlgmr.msra.gmra.mxu0 %v4063_v54  ;;  %3442 = vmatprep.subr.mxu0 %v4063_v54 }
 0x41f   :  { %3443 = vmatpush3.msra.mxu0 %v4229_v55  ;;  %3458 = vmatprep.mubr.msk.f32.mxu0 %vm4064_vm2, %v4063_v54 }
 0x420   :  { %3444 = vmatprep.subr.mxu0 %v4063_v54 }
 0x421   :  { %3445 = vmatpush3.msra.mxu0 %v4234_v56 }
 0x422   :  { %3446 = vmatprep.subr.mxu0 %v4063_v54 }
 0x423   :  { %3447 = vmatpush3.msra.mxu0 %v4244_v57 }
 0x424   :  { %3448 = vmatprep.subr.mxu0 %v4063_v54 }
 0x425   :  { %3449 = vmatpush3.msra.mxu0 %v4251_v58 }
 0x426   :  { %3450 = vmatprep.subr.mxu0 %v4063_v54 }
 0x427   :  { %3451 = vmatpush3.msra.mxu0 %v4258_v59 }
 0x428   :  { %3452 = vmatprep.subr.mxu0 %v4063_v54 }
 0x429   :  { %3453 = vmatpush3.msra.mxu0 %v4265_v60 }
 0x42a   :  { %3454 = vmatprep.subr.mxu0 %v4063_v54 }
 0x42b   :  { %3455 = vmatpush3.msra.mxu0 %v4272_v61 }
 0x42c   :  { %3456 = vmatprep.subr.mxu0 %v4063_v54 }
 0x42d   :  { %3457 = vmatpush3.msra.mxu0 %v4279_v62 }
 0x42e   :  { %3480 = vmatprep.subr.mxu0 %v4063_v54 }
 0x4be   :  { %v402_v2 = vpop.f32.mrf.mxu0 }
 0x4bf   :  { %v4520_v12 = vadd.f32 %v402_v2, %v323_v8 }
 0x4c0   :  { %v404_v4 = vpop.f32.mrf.mxu0 }
 0x4c1   :  { %v4535_v46 = vadd.f32 %v404_v4, %v327_v41 }
 0x4c2   :  { %v408_v7 = vpop.f32.mrf.mxu0 }
 0x4c3   :  { %v4523_v15 = vadd.f32 %v408_v7, %v323_v8  ;;  %v692_v7 = vpop.permute.xlu1 %691 }
 0x4c4   :  { %v410_v9 = vpop.f32.mrf.mxu0  ;;  %v697_v8 = vadd.f32 %v692_v7, %v4520_v12 }
 0x4c5   :  { %v4533_v43 = vadd.f32 %v410_v9, %v327_v41  ;;  %v698_v6 = vadd.f32 %v694_v5, %v4523_v15 }
 0x4c6   :  { %v3013_v9 = vmul.f32 -1.442695, %v697_v8 }
 0x4c7   :  { %v3014_v4 = vmul.f32 -1.442695, %v698_v6 }
 0x4ce   :  { %v515_v11 = vpop.f32.mrf.mxu0 }
 0x4cf   :  { %v516_v13 = vadd.f32 %v4518_v10, %v515_v11 }
 0x4d0   :  { %v3384_v14 = vpop.f32.mrf.mxu0 }
 0x4d1   :  { %v672_v16 = vrot.slane %v516_v13, 1  ;;  %v675_v17 = vadd.f32 %v516_v13, %v4520_v12 }
 0x4d3   :  { %v676_v18 = vadd.f32 %v672_v16, %v4523_v15  ;;  %v3011_v19 = vmul.f32 -1.442695, %v675_v17 }
 0x4d5   :  { %v3012_v20 = vmul.f32 -1.442695, %v676_v18  ;;  %3872 = vpow2.f32 %v3011_v19 }
 0x4d7   :  { %3874 = vpow2.f32 %v3012_v20 }
 0x4de   :  { %v667_v21 = vpop.f32.mrf.mxu0 }
 0x4df   :  { %v668_v37 = vadd.f32 %v4530_v36, %v667_v21 }
 0x4e0   :  { %v3422_v22 = vpop.f32.mrf.mxu0 }
 0x4e1   :  { %v712_v39 = vrot.slane %v668_v37, 1 }
 0x4e2   :  { %v3873_v23 = vpop.eup %3872 }
 0x4e3   :  { %v683_v34 = vadd.f32 1.0, %v3873_v23 }
 0x4e4   :  { %v3875_v24 = vpop.eup %3874 }
 0x4e5   :  { %v684_v35 = vadd.f32 1.0, %v3875_v24  ;;  %3876 = vrcp.f32 %v683_v34 }
 0x4e7   :  { %3878 = vrcp.f32 %v684_v35 }
 0x4f2   :  { %v3877_v40 = vpop.eup %3876 }
 0x4f3   :  { %v715_v44 = vmul.f32 %v3877_v40, %v668_v37 }
 0x4f4   :  { %v3879_v42 = vpop.eup %3878 }
 0x4f5   :  { %v716_v45 = vmul.f32 %v3879_v42, %v712_v39  ;;  %v717_v1 = vadd.f32 %v715_v44, %v4535_v46 }
 0x4f7   :  { %v718_v47 = vadd.f32 %v716_v45, %v4533_v43 }
 0x4f9   :  { %3880 = vtanh.f32 %v718_v47 }
 0x4fa   :  { %3882 = vtanh.f32 %v717_v1 }
 0x4fb   :  { %3884 = vpow2.f32 %v3014_v4 }
 0x4fc   :  { %3886 = vpow2.f32 %v3013_v9 }
 0x506   :  { %v3881_v2 = vpop.eup %3880 }
 0x507   :  { %727 = vrot.lane.b32.xlu1 %v3881_v2, %s4065_s30  ;;  %v3883_v3 = vpop.eup %3882 }
 0x508   :  { %v3885_v11 = vpop.eup %3884 }
 0x509   :  { %v706_v13 = vadd.f32 1.0, %v3885_v11  ;;  %v3887_v14 = vpop.eup %3886 }
 0x50a   :  { %v705_v16 = vadd.f32 1.0, %v3887_v14 }
 0x50b   :  { %725 = vrot.lane.b32.xlu1 %v3883_v3, %s4065_s30  ;;  %3888 = vrcp.f32 %v706_v13 }
 0x50c   :  { %3890 = vrcp.f32 %v705_v16 }
 0x518   :  { %v3889_v17 = vpop.eup %3888 }
 0x519   :  { %v722_v18 = vsub.f32 1.0, %v3889_v17  ;;  %v3891_v19 = vpop.eup %3890  ;;  %v734_v22 = vmul.f32 0.0, %v3889_v17 }
 0x51a   :  { %v721_v24 = vsub.f32 1.0, %v3891_v19  ;;  %v733_v35 = vmul.f32 0.0, %v3891_v19 }
 0x579   :  { %v728_v20 = vpop.permute.xlu1 %727 }
 0x57a   :  { %v732_v21 = vmul.f32 %v728_v20, %v722_v18 }
 0x57c   :  { %v4543_v23 = vadd.f32 %v734_v22, %v732_v21 }
 0x57d   :  { %v726_v34 = vpop.permute.xlu1 %725 }
 0x57e   :  { %v731_v37 = vmul.f32 %v726_v34, %v721_v24  ;;  %v739_v38 = vrot.slane %v4543_v23, 7 }
 0x580   :  { %v4546_v39 = vadd.f32 %v733_v35, %v731_v37 }
 0x582   :  { %v741_v40 = vsel %vm740_vm3, %v739_v38, %v4546_v39 }
 0x583   :  { %742 = vrot.lane.b32.xlu0 %v741_v40, %s4065_s30 }
 0x5f5   :  { %v743_v41 = vpop.permute.xlu0 %742 }
 0x5f6   :  { %3440 = vmatmul.mubr.msk.f32.vlgmr.msra.gmra.mxu1 %vm274_vm1, %v743_v41  ;;  %3459 = vmatmul.mubr.msk.f32.vlgmr.msra.gmra.mxu0 %vm274_vm1, %v743_v41 }
 0x5f7   :  { %3462 = vmatpush3.msra.mxu1 %v4435_v48  ;;  %3477 = vmatprep.mubr.msk.f32.mxu1 %vm4064_vm2, %v4063_v54 }
 0x5f8   :  { %3463 = vmatprep.subr.mxu1 %v4063_v54  ;;  %3481 = vmatpush3.msra.mxu0 %v4350_v25 }
 0x5f9   :  { %3464 = vmatpush3.msra.mxu1 %v4443_v49  ;;  %3482 = vmatprep.subr.mxu0 %v4063_v54 }
 0x5fa   :  { %3465 = vmatprep.subr.mxu1 %v4063_v54  ;;  %3483 = vmatpush3.msra.mxu0 %v4357_v26 }
 0x5fb   :  { %3466 = vmatpush3.msra.mxu1 %v4452_v50  ;;  %3484 = vmatprep.subr.mxu0 %v4063_v54 }
 0x5fc   :  { %3467 = vmatprep.subr.mxu1 %v4063_v54  ;;  %3485 = vmatpush3.msra.mxu0 %v4363_v27 }
 0x5fd   :  { %3468 = vmatpush3.msra.mxu1 %v4459_v51  ;;  %3486 = vmatprep.subr.mxu0 %v4063_v54 }
 0x5fe   :  { %3469 = vmatprep.subr.mxu1 %v4063_v54  ;;  %3487 = vmatpush3.msra.mxu0 %v4370_v28 }
 0x5ff   :  { %3470 = vmatpush3.msra.mxu1 %v4466_v52  ;;  %3488 = vmatprep.subr.mxu0 %v4063_v54 }
 0x600   :  { %3471 = vmatprep.subr.mxu1 %v4063_v54  ;;  %3489 = vmatpush3.msra.mxu0 %v4377_v29 }
 0x601   :  { %3472 = vmatpush3.msra.mxu1 %v4473_v53  ;;  %3490 = vmatprep.subr.mxu0 %v4063_v54 }
 0x602   :  { %3473 = vmatprep.subr.mxu1 %v4063_v54  ;;  %3491 = vmatpush3.msra.mxu0 %v4384_v30 }
 0x603   :  { %3474 = vmatpush3.msra.mxu1 %v4480_v63  ;;  %3492 = vmatprep.subr.mxu0 %v4063_v54 }
 0x604   :  { %3475 = vmatprep.subr.mxu1 %v4063_v54  ;;  %3493 = vmatpush3.msra.mxu0 %v4391_v31 }
 0x605   :  { %3476 = vmatpush3.msra.mxu1 %v4487_v0  ;;  %3494 = vmatprep.subr.mxu0 %v4063_v54 }
 0x606   :  { %3478 = vmatmul.mubr.msk.f32.vlgmr.msra.gmra.mxu1 %vm274_vm1, %v743_v41  ;;  %3499 = vmatprep.subr.mxu1 %v4063_v54 }
 0x607   :  { %3500 = vmatpush3.msra.mxu1 %v4229_v55  ;;  %3495 = vmatpush3.msra.mxu0 %v4398_v32 }
 0x608   :  { %3501 = vmatprep.subr.mxu1 %v4063_v54  ;;  %3496 = vmatprep.mubr.msk.f32.mxu0 %vm4064_vm2, %v4063_v54 }
 0x609   :  { %3502 = vmatpush3.msra.mxu1 %v4234_v56  ;;  %3515 = vmatprep.mubr.msk.f32.mxu1 %vm4064_vm2, %v4063_v54 }
 0x60a   :  { %3503 = vmatprep.subr.mxu1 %v4063_v54  ;;  %3518 = vmatprep.subr.mxu0 %v4063_v54 }
 0x60b   :  { %3504 = vmatpush3.msra.mxu1 %v4244_v57 }
 0x60c   :  { %3505 = vmatprep.subr.mxu1 %v4063_v54 }
 0x60d   :  { %3506 = vmatpush3.msra.mxu1 %v4251_v58 }
 0x60e   :  { %3507 = vmatprep.subr.mxu1 %v4063_v54 }
 0x60f   :  { %3508 = vmatpush3.msra.mxu1 %v4258_v59 }
 0x610   :  { %3509 = vmatprep.subr.mxu1 %v4063_v54 }
 0x611   :  { %3510 = vmatpush3.msra.mxu1 %v4265_v60 }
 0x612   :  { %3511 = vmatprep.subr.mxu1 %v4063_v54 }
 0x613   :  { %3512 = vmatpush3.msra.mxu1 %v4272_v61 }
 0x614   :  { %3513 = vmatprep.subr.mxu1 %v4063_v54 }
 0x615   :  { %3514 = vmatpush3.msra.mxu1 %v4279_v62 }
 0x616   :  { %3537 = vmatprep.subr.mxu1 %v4063_v54 }
 0x6b6   :  { %v812_v42 = vpop.f32.mrf.mxu1  ;;  %v882_v44 = vpop.f32.mrf.mxu0 }
 0x6b7   :  { %v813_v45 = vadd.f32 %v4518_v10, %v812_v42  ;;  %v883_v47 = vadd.f32 %v4406_v33, %v882_v44 }
 0x6b8   :  { %v3441_v1 = vpop.f32.mrf.mxu1  ;;  %v3460_v2 = vpop.f32.mrf.mxu0 }
 0x6b9   :  { %v957_v3 = vrot.slane %v813_v45, 7  ;;  %v961_v5 = vadd.f32 %v813_v45, %v4523_v15  ;;  %v975_v6 = vrot.slane %v883_v47, 7  ;;  %978 = vrot.lane.b32.xlu0 %v883_v47, %s4065_s30 }
 0x6bb   :  { %v960_v7 = vadd.f32 %v957_v3, %v4520_v12  ;;  %v3019_v8 = vmul.f32 -1.442695, %v961_v5  ;;  %976 = vrot.lane.b32.xlu1 %v975_v6, %s4065_s30 }
 0x6bd   :  { %v3018_v4 = vmul.f32 -1.442695, %v960_v7  ;;  %3892 = vpow2.f32 %v3019_v8 }
 0x6bf   :  { %3894 = vpow2.f32 %v3018_v4 }
 0x6c6   :  { %v952_v9 = vpop.f32.mrf.mxu1 }
 0x6c7   :  { %v953_v18 = vadd.f32 %v4530_v36, %v952_v9  ;;  %v1018_v9 = vrot.slane %v4546_v39, 7 }
 0x6c8   :  { %v3479_v11 = vpop.f32.mrf.mxu1 }
 0x6c9   :  { %v997_v20 = vrot.slane %v953_v18, 7 }
 0x6ca   :  { %v3893_v13 = vpop.eup %3892 }
 0x6cb   :  { %v969_v14 = vadd.f32 1.0, %v3893_v13 }
 0x6cc   :  { %v3895_v16 = vpop.eup %3894 }
 0x6cd   :  { %v968_v17 = vadd.f32 1.0, %v3895_v16  ;;  %3896 = vrcp.f32 %v969_v14 }
 0x6cf   :  { %3898 = vrcp.f32 %v968_v17 }
 0x6da   :  { %v3897_v19 = vpop.eup %3896 }
 0x6db   :  { %v1001_v21 = vmul.f32 %v3897_v19, %v953_v18 }
 0x6dc   :  { %v3899_v22 = vpop.eup %3898 }
 0x6dd   :  { %v1000_v24 = vmul.f32 %v3899_v22, %v997_v20  ;;  %v1003_v34 = vadd.f32 %v1001_v21, %v4533_v43 }
 0x6df   :  { %v1002_v35 = vadd.f32 %v1000_v24, %v4535_v46  ;;  %3900 = vtanh.f32 %v1003_v34 }
 0x6e1   :  { %3902 = vtanh.f32 %v1002_v35 }
 0x6ec   :  { %v3901_v37 = vpop.eup %3900 }
 0x6ed   :  { %1012 = vrot.lane.b32.xlu0 %v3901_v37, %s4065_s30 }
 0x6ee   :  { %v3903_v40 = vpop.eup %3902 }
 0x6ef   :  { %1010 = vrot.lane.b32.xlu1 %v3903_v40, %s4065_s30 }
 0x72b   :  { %v979_v41 = vpop.permute.xlu0 %978 }
 0x72c   :  { %v983_v44 = vadd.f32 %v979_v41, %v4523_v15 }
 0x72d   :  { %v977_v42 = vpop.permute.xlu1 %976 }
 0x72e   :  { %v982_v45 = vadd.f32 %v977_v42, %v4520_v12  ;;  %v3021_v47 = vmul.f32 -1.442695, %v983_v44 }
 0x730   :  { %v3020_v1 = vmul.f32 -1.442695, %v982_v45  ;;  %3904 = vpow2.f32 %v3021_v47 }
 0x732   :  { %3906 = vpow2.f32 %v3020_v1 }
 0x73d   :  { %v3905_v2 = vpop.eup %3904 }
 0x73e   :  { %v991_v5 = vadd.f32 1.0, %v3905_v2 }
 0x73f   :  { %v3907_v3 = vpop.eup %3906 }
 0x740   :  { %v990_v6 = vadd.f32 1.0, %v3907_v3  ;;  %3908 = vrcp.f32 %v991_v5 }
 0x742   :  { %3910 = vrcp.f32 %v990_v6 }
 0x74d   :  { %v3909_v7 = vpop.eup %3908 }
 0x74e   :  { %v1007_v11 = vsub.f32 1.0, %v3909_v7  ;;  %v1022_v19 = vmul.f32 %v3909_v7, %v739_v38 }
 0x74f   :  { %v3911_v8 = vpop.eup %3910 }
 0x750   :  { %v1006_v13 = vsub.f32 1.0, %v3911_v8  ;;  %v1021_v17 = vmul.f32 %v3911_v8, %v1018_v9 }
 0x75f   :  { %v1013_v4 = vpop.permute.xlu0 %1012 }
 0x760   :  { %v1017_v16 = vmul.f32 %v1013_v4, %v1007_v11 }
 0x761   :  { %v1011_v14 = vpop.permute.xlu1 %1010 }
 0x762   :  { %v1016_v18 = vmul.f32 %v1011_v14, %v1006_v13  ;;  %v4628_v21 = vadd.f32 %v1022_v19, %v1017_v16 }
 0x764   :  { %v4626_v20 = vadd.f32 %v1021_v17, %v1016_v18 }
 0x766   :  { %v1027_v22 = vrot.slane %v4626_v20, 1 }
 0x768   :  { %v1028_v24 = vsel %vm740_vm3, %v4628_v21, %v1027_v22 }
 0x769   :  { %1029 = vrot.lane.b32.xlu1 %v1028_v24, %s4065_s30 }
 0x7db   :  { %v1030_v39 = vpop.permute.xlu1 %1029 }
 0x7dc   :  { %3497 = vmatmul.mubr.msk.f32.vlgmr.msra.gmra.mxu0 %vm274_vm1, %v1030_v39  ;;  %3516 = vmatmul.mubr.msk.f32.vlgmr.msra.gmra.mxu1 %vm274_vm1, %v1030_v39 }
 0x7dd   :  { %3519 = vmatpush3.msra.mxu0 %v4435_v48  ;;  %3534 = vmatprep.mubr.msk.f32.mxu0 %vm4064_vm2, %v4063_v54 }
 0x7de   :  { %3520 = vmatprep.subr.mxu0 %v4063_v54  ;;  %3538 = vmatpush3.msra.mxu1 %v4350_v25 }
 0x7df   :  { %3521 = vmatpush3.msra.mxu0 %v4443_v49  ;;  %3539 = vmatprep.subr.mxu1 %v4063_v54 }
 0x7e0   :  { %3522 = vmatprep.subr.mxu0 %v4063_v54  ;;  %3540 = vmatpush3.msra.mxu1 %v4357_v26 }
 0x7e1   :  { %3523 = vmatpush3.msra.mxu0 %v4452_v50  ;;  %3541 = vmatprep.subr.mxu1 %v4063_v54 }
 0x7e2   :  { %3524 = vmatprep.subr.mxu0 %v4063_v54  ;;  %3542 = vmatpush3.msra.mxu1 %v4363_v27 }
 0x7e3   :  { %3525 = vmatpush3.msra.mxu0 %v4459_v51  ;;  %3543 = vmatprep.subr.mxu1 %v4063_v54 }
 0x7e4   :  { %3526 = vmatprep.subr.mxu0 %v4063_v54  ;;  %3544 = vmatpush3.msra.mxu1 %v4370_v28 }
 0x7e5   :  { %3527 = vmatpush3.msra.mxu0 %v4466_v52  ;;  %3545 = vmatprep.subr.mxu1 %v4063_v54 }
 0x7e6   :  { %3528 = vmatprep.subr.mxu0 %v4063_v54  ;;  %3546 = vmatpush3.msra.mxu1 %v4377_v29 }
 0x7e7   :  { %3529 = vmatpush3.msra.mxu0 %v4473_v53  ;;  %3547 = vmatprep.subr.mxu1 %v4063_v54 }
 0x7e8   :  { %3530 = vmatprep.subr.mxu0 %v4063_v54  ;;  %3548 = vmatpush3.msra.mxu1 %v4384_v30 }
 0x7e9   :  { %3531 = vmatpush3.msra.mxu0 %v4480_v63  ;;  %3549 = vmatprep.subr.mxu1 %v4063_v54 }
 0x7ea   :  { %3532 = vmatprep.subr.mxu0 %v4063_v54  ;;  %3550 = vmatpush3.msra.mxu1 %v4391_v31 }
 0x7eb   :  { %3533 = vmatpush3.msra.mxu0 %v4487_v0  ;;  %3551 = vmatprep.subr.mxu1 %v4063_v54 }
 0x7ec   :  { %3535 = vmatmul.mubr.msk.f32.vlgmr.msra.gmra.mxu0 %vm274_vm1, %v1030_v39  ;;  %3556 = vmatprep.subr.mxu0 %v4063_v54 }
 0x7ed   :  { %3557 = vmatpush3.msra.mxu0 %v4229_v55  ;;  %3552 = vmatpush3.msra.mxu1 %v4398_v32 }
 0x7ee   :  { %3558 = vmatprep.subr.mxu0 %v4063_v54  ;;  %3553 = vmatprep.mubr.msk.f32.mxu1 %vm4064_vm2, %v4063_v54 }
 0x7ef   :  { %3559 = vmatpush3.msra.mxu0 %v4234_v56  ;;  %3572 = vmatprep.mubr.msk.f32.mxu0 %vm4064_vm2, %v4063_v54 }
 0x7f0   :  { %3560 = vmatprep.subr.mxu0 %v4063_v54  ;;  %3575 = vmatprep.subr.mxu1 %v4063_v54 }
 0x7f1   :  { %3561 = vmatpush3.msra.mxu0 %v4244_v57 }
 0x7f2   :  { %3562 = vmatprep.subr.mxu0 %v4063_v54 }
 0x7f3   :  { %3563 = vmatpush3.msra.mxu0 %v4251_v58 }
 0x7f4   :  { %3564 = vmatprep.subr.mxu0 %v4063_v54 }
 0x7f5   :  { %3565 = vmatpush3.msra.mxu0 %v4258_v59 }
 0x7f6   :  { %3566 = vmatprep.subr.mxu0 %v4063_v54 }
 0x7f7   :  { %3567 = vmatpush3.msra.mxu0 %v4265_v60 }
 0x7f8   :  { %3568 = vmatprep.subr.mxu0 %v4063_v54 }
 0x7f9   :  { %3569 = vmatpush3.msra.mxu0 %v4272_v61 }
 0x7fa   :  { %3570 = vmatprep.subr.mxu0 %v4063_v54 }
 0x7fb   :  { %3571 = vmatpush3.msra.mxu0 %v4279_v62 }
 0x7fc   :  { %3594 = vmatprep.subr.mxu0 %v4063_v54 }
 0x89c   :  { %v1099_v55 = vpop.f32.mrf.mxu0  ;;  %v1169_v56 = vpop.f32.mrf.mxu1 }
 0x89d   :  { %v1100_v57 = vadd.f32 %v4518_v10, %v1099_v55  ;;  %v1170_v58 = vadd.f32 %v4406_v33, %v1169_v56 }
 0x89e   :  { %v3498_v59 = vpop.f32.mrf.mxu0  ;;  %v3517_v23 = vpop.f32.mrf.mxu1 }
 0x89f   :  { %v1244_v38 = vrot.slane %v1100_v57, 6  ;;  %v1245_v60 = vrot.slane %v1100_v57, 7  ;;  %v1263_v34 = vrot.slane %v1170_v58, 6  ;;  %v1264_v35 = vrot.slane %v1170_v58, 7 }
 0x8a0   :  { %v1308_v23 = vrot.slane %v4626_v20, 7 }
 0x8a1   :  { %v1248_v61 = vadd.f32 %v1244_v38, %v4520_v12  ;;  %v1249_v37 = vadd.f32 %v1245_v60, %v4523_v15  ;;  %1267 = vrot.lane.b32.xlu1 %v1264_v35, %s4065_s30  ;;  %1265 = vrot.lane.b32.xlu0 %v1263_v34, %s4065_s30  ;;  %v1309_v60 = vrot.slane %v4628_v21, 7 }
 0x8a3   :  { %v3025_v62 = vmul.f32 -1.442695, %v1248_v61  ;;  %v3026_v40 = vmul.f32 -1.442695, %v1249_v37 }
 0x8a5   :  { %3912 = vpow2.f32 %v3025_v62 }
 0x8a6   :  { %3914 = vpow2.f32 %v3026_v40 }
 0x8ac   :  { %v1239_v41 = vpop.f32.mrf.mxu0 }
 0x8ad   :  { %v1240_v2 = vadd.f32 %v4530_v36, %v1239_v41 }
 0x8ae   :  { %v3536_v42 = vpop.f32.mrf.mxu0 }
 0x8af   :  { %v1286_v3 = vrot.slane %v1240_v2, 6  ;;  %v1287_v6 = vrot.slane %v1240_v2, 7 }
 0x8b2   :  { %v3913_v44 = vpop.eup %3912 }
 0x8b3   :  { %v3915_v45 = vpop.eup %3914  ;;  %v1256_v47 = vadd.f32 1.0, %v3913_v44 }
 0x8b4   :  { %v1257_v1 = vadd.f32 1.0, %v3915_v45 }
 0x8b5   :  { %3916 = vrcp.f32 %v1256_v47 }
 0x8b6   :  { %3918 = vrcp.f32 %v1257_v1 }
 0x8c2   :  { %v3917_v5 = vpop.eup %3916 }
 0x8c3   :  { %v3919_v7 = vpop.eup %3918  ;;  %v1290_v8 = vmul.f32 %v3917_v5, %v1286_v3 }
 0x8c4   :  { %v1291_v4 = vmul.f32 %v3919_v7, %v1287_v6 }
 0x8c5   :  { %v1292_v9 = vadd.f32 %v1290_v8, %v4535_v46 }
 0x8c6   :  { %v1293_v11 = vadd.f32 %v1291_v4, %v4533_v43 }
 0x8c7   :  { %3920 = vtanh.f32 %v1292_v9 }
 0x8c8   :  { %3922 = vtanh.f32 %v1293_v11 }
 0x8d4   :  { %v3921_v13 = vpop.eup %3920 }
 0x8d5   :  { %v3923_v14 = vpop.eup %3922  ;;  %1300 = vrot.lane.b32.xlu0 %v3921_v13, %s4065_s30 }
 0x8d6   :  { %1302 = vrot.lane.b32.xlu1 %v3923_v14, %s4065_s30 }
 0x913   :  { %v1266_v16 = vpop.permute.xlu0 %1265  ;;  %v1268_v17 = vpop.permute.xlu1 %1267 }
 0x914   :  { %v1271_v18 = vadd.f32 %v1266_v16, %v4520_v12  ;;  %v1272_v19 = vadd.f32 %v1268_v17, %v4523_v15 }
 0x916   :  { %v3027_v22 = vmul.f32 -1.442695, %v1271_v18  ;;  %v3028_v24 = vmul.f32 -1.442695, %v1272_v19 }
 0x918   :  { %3924 = vpow2.f32 %v3027_v22 }
 0x919   :  { %3926 = vpow2.f32 %v3028_v24 }
 0x925   :  { %v3925_v39 = vpop.eup %3924 }
 0x926   :  { %v3927_v55 = vpop.eup %3926  ;;  %v1279_v56 = vadd.f32 1.0, %v3925_v39 }
 0x927   :  { %v1280_v57 = vadd.f32 1.0, %v3927_v55 }
 0x928   :  { %3928 = vrcp.f32 %v1279_v56 }
 0x929   :  { %3930 = vrcp.f32 %v1280_v57 }
 0x935   :  { %v3929_v58 = vpop.eup %3928 }
 0x936   :  { %v3931_v59 = vpop.eup %3930  ;;  %v1296_v38 = vsub.f32 1.0, %v3929_v58  ;;  %v1312_v37 = vmul.f32 %v3929_v58, %v1308_v23 }
 0x937   :  { %v1297_v34 = vsub.f32 1.0, %v3931_v59  ;;  %v1313_v40 = vmul.f32 %v3931_v59, %v1309_v60 }
 0x947   :  { %v1301_v35 = vpop.permute.xlu0 %1300 }
 0x948   :  { %v1303_v61 = vpop.permute.xlu1 %1302  ;;  %v1306_v62 = vmul.f32 %v1301_v35, %v1296_v38 }
 0x949   :  { %v1307_v41 = vmul.f32 %v1303_v61, %v1297_v34 }
 0x94a   :  { %v4706_v42 = vadd.f32 %v1312_v37, %v1306_v62 }
 0x94b   :  { %v4708_v44 = vadd.f32 %v1313_v40, %v1307_v41 }
 0x94c   :  { %v1318_v45 = vrot.slane %v4706_v42, 2 }
 0x94d   :  { %v1319_v47 = vrot.slane %v4708_v44, 1 }
 0x94f   :  { %v1320_v20 = vsel %vm740_vm3, %v1319_v47, %v1318_v45 }
 0x950   :  { %1321 = vrot.lane.b32.xlu0 %v1320_v20, %s4065_s30 }
 0x9c2   :  { %v1322_v21 = vpop.permute.xlu0 %1321 }
 0x9c3   :  { %3554 = vmatmul.mubr.msk.f32.vlgmr.msra.gmra.mxu1 %vm274_vm1, %v1322_v21  ;;  %3573 = vmatmul.mubr.msk.f32.vlgmr.msra.gmra.mxu0 %vm274_vm1, %v1322_v21 }
 0x9c4   :  { %3576 = vmatpush3.msra.mxu1 %v4435_v48  ;;  %3591 = vmatprep.mubr.msk.f32.mxu1 %vm4064_vm2, %v4063_v54 }
 0x9c5   :  { %3577 = vmatprep.subr.mxu1 %v4063_v54  ;;  %3595 = vmatpush3.msra.mxu0 %v4350_v25  ;;  %v4752_v25 = vld [vmem:[%s5293_s8 + $0x38] sm:$0xff] }
 0x9c6   :  { %3578 = vmatpush3.msra.mxu1 %v4443_v49  ;;  %3596 = vmatprep.subr.mxu0 %v4063_v54 }
 0x9c7   :  { %3579 = vmatprep.subr.mxu1 %v4063_v54  ;;  %3597 = vmatpush3.msra.mxu0 %v4357_v26  ;;  %v4762_v26 = vld [vmem:[%s5293_s8 + $0x30] sm:$0xff] }
 0x9c8   :  { %3580 = vmatpush3.msra.mxu1 %v4452_v50  ;;  %3598 = vmatprep.subr.mxu0 %v4063_v54 }
 0x9c9   :  { %3581 = vmatprep.subr.mxu1 %v4063_v54  ;;  %3599 = vmatpush3.msra.mxu0 %v4363_v27  ;;  %v4772_v27 = vld [vmem:[%s5293_s8 + $0x28] sm:$0xff] }
 0x9ca   :  { %3582 = vmatpush3.msra.mxu1 %v4459_v51  ;;  %3600 = vmatprep.subr.mxu0 %v4063_v54 }
 0x9cb   :  { %3583 = vmatprep.subr.mxu1 %v4063_v54  ;;  %3601 = vmatpush3.msra.mxu0 %v4370_v28  ;;  %v4779_v28 = vld [vmem:[%s5293_s8 + $0x20] sm:$0xff] }
 0x9cc   :  { %3584 = vmatpush3.msra.mxu1 %v4466_v52  ;;  %3602 = vmatprep.subr.mxu0 %v4063_v54 }
 0x9cd   :  { %3585 = vmatprep.subr.mxu1 %v4063_v54  ;;  %3603 = vmatpush3.msra.mxu0 %v4377_v29  ;;  %v4786_v29 = vld [vmem:[%s5293_s8 + $0x18] sm:$0xff] }
 0x9ce   :  { %3586 = vmatpush3.msra.mxu1 %v4473_v53  ;;  %3604 = vmatprep.subr.mxu0 %v4063_v54 }
 0x9cf   :  { %3587 = vmatprep.subr.mxu1 %v4063_v54  ;;  %3605 = vmatpush3.msra.mxu0 %v4384_v30  ;;  %v4793_v30 = vld [vmem:[%s5293_s8 + $0x10] sm:$0xff] }
 0x9d0   :  { %3588 = vmatpush3.msra.mxu1 %v4480_v63  ;;  %3606 = vmatprep.subr.mxu0 %v4063_v54 }
 0x9d1   :  { %3589 = vmatprep.subr.mxu1 %v4063_v54  ;;  %3607 = vmatpush3.msra.mxu0 %v4391_v31  ;;  %v4800_v31 = vld [vmem:[%s5293_s8 + $0x8] sm:$0xff] }
 0x9d2   :  { %3590 = vmatpush3.msra.mxu1 %v4487_v0  ;;  %3608 = vmatprep.subr.mxu0 %v4063_v54 }
 0x9d3   :  { %3592 = vmatmul.mubr.msk.f32.vlgmr.msra.gmra.mxu1 %vm274_vm1, %v1322_v21  ;;  %3613 = vmatprep.subr.mxu1 %v4063_v54 }
 0x9d4   :  { %3614 = vmatpush3.msra.mxu1 %v4752_v25  ;;  %3609 = vmatpush3.msra.mxu0 %v4398_v32  ;;  %v4807_v32 = vld [vmem:[%s5293_s8] sm:$0xff] }
 0x9d5   :  { %3615 = vmatprep.subr.mxu1 %v4063_v54  ;;  %3610 = vmatprep.mubr.msk.f32.mxu0 %vm4064_vm2, %v4063_v54 }
 0x9d6   :  { %3616 = vmatpush3.msra.mxu1 %v4762_v26  ;;  %3629 = vmatprep.mubr.msk.f32.mxu1 %vm4064_vm2, %v4063_v54 }
 0x9d7   :  { %3617 = vmatprep.subr.mxu1 %v4063_v54  ;;  %3632 = vmatprep.subr.mxu0 %v4063_v54 }
 0x9d8   :  { %3618 = vmatpush3.msra.mxu1 %v4772_v27 }
 0x9d9   :  { %3619 = vmatprep.subr.mxu1 %v4063_v54 }
 0x9da   :  { %3620 = vmatpush3.msra.mxu1 %v4779_v28 }
 0x9db   :  { %3621 = vmatprep.subr.mxu1 %v4063_v54 }
 0x9dc   :  { %3622 = vmatpush3.msra.mxu1 %v4786_v29 }
 0x9dd   :  { %3623 = vmatprep.subr.mxu1 %v4063_v54 }
 0x9de   :  { %3624 = vmatpush3.msra.mxu1 %v4793_v30 }
 0x9df   :  { %3625 = vmatprep.subr.mxu1 %v4063_v54 }
 0x9e0   :  { %3626 = vmatpush3.msra.mxu1 %v4800_v31 }
 0x9e1   :  { %3627 = vmatprep.subr.mxu1 %v4063_v54 }
 0x9e2   :  { %3628 = vmatpush3.msra.mxu1 %v4807_v32 }
 0x9e3   :  { %3651 = vmatprep.subr.mxu1 %v4063_v54 }
 0xa83   :  { %v1391_v52 = vpop.f32.mrf.mxu1  ;;  %v1461_v53 = vpop.f32.mrf.mxu0 }
 0xa84   :  { %v1392_v63 = vadd.f32 %v4518_v10, %v1391_v52  ;;  %v1462_v0 = vadd.f32 %v4406_v33, %v1461_v53  ;;  %v1600_v52 = vrot.slane %v4706_v42, 7 }
 0xa85   :  { %v3555_v1 = vpop.f32.mrf.mxu1  ;;  %v3574_v2 = vpop.f32.mrf.mxu0 }
 0xa86   :  { %v1536_v3 = vrot.slane %v1392_v63, 5  ;;  %v1537_v5 = vrot.slane %v1392_v63, 6  ;;  %v1555_v6 = vrot.slane %v1462_v0, 5  ;;  %v1556_v7 = vrot.slane %v1462_v0, 6 }
 0xa87   :  { %v1601_v63 = vrot.slane %v4708_v44, 7 }
 0xa88   :  { %v1540_v8 = vadd.f32 %v1536_v3, %v4520_v12  ;;  %v1541_v4 = vadd.f32 %v1537_v5, %v4523_v15  ;;  %1559 = vrot.lane.b32.xlu0 %v1556_v7, %s4065_s30  ;;  %1557 = vrot.lane.b32.xlu1 %v1555_v6, %s4065_s30 }
 0xa8a   :  { %v3032_v9 = vmul.f32 -1.442695, %v1540_v8  ;;  %v3033_v11 = vmul.f32 -1.442695, %v1541_v4 }
 0xa8c   :  { %3932 = vpow2.f32 %v3032_v9 }
 0xa8d   :  { %3934 = vpow2.f32 %v3033_v11 }
 0xa93   :  { %v1531_v13 = vpop.f32.mrf.mxu1 }
 0xa94   :  { %v1532_v19 = vadd.f32 %v4530_v36, %v1531_v13  ;;  %v4843_v13 = vld [vmem:[%s5295_s7 + $0x38] sm:$0xff] }
 0xa95   :  { %v3593_v33 = vpop.f32.mrf.mxu1 }
 0xa96   :  { %v1578_v22 = vrot.slane %v1532_v19, 5  ;;  %v1579_v39 = vrot.slane %v1532_v19, 6  ;;  %v4876_v33 = vld [vmem:[%s5297_s9 + $0x18] sm:$0xff]  ;;  %v4918_v19 = vld [vmem:[%s5297_s9] sm:$0xff] }
 0xa99   :  { %v3933_v14 = vpop.eup %3932 }
 0xa9a   :  { %v3935_v16 = vpop.eup %3934  ;;  %v1548_v17 = vadd.f32 1.0, %v3933_v14  ;;  %v4890_v14 = vld [vmem:[%s5297_s9 + $0x10] sm:$0xff] }
 0xa9b   :  { %v1549_v18 = vadd.f32 1.0, %v3935_v16  ;;  %v4898_v16 = vld [vmem:[%s5295_s7 + $0x10] sm:$0xff] }
 0xa9c   :  { %3936 = vrcp.f32 %v1548_v17  ;;  %v4904_v17 = vld [vmem:[%s5297_s9 + $0x8] sm:$0xff] }
 0xa9d   :  { %3938 = vrcp.f32 %v1549_v18  ;;  %v4912_v18 = vld [vmem:[%s5295_s7 + $0x8] sm:$0xff] }
 0xaa9   :  { %v3937_v24 = vpop.eup %3936 }
 0xaaa   :  { %v3939_v55 = vpop.eup %3938  ;;  %v1582_v56 = vmul.f32 %v3937_v24, %v1578_v22  ;;  %v4928_v22 = vld [vmem:[%s5295_s7] sm:$0xff] }
 0xaab   :  { %v1583_v57 = vmul.f32 %v3939_v55, %v1579_v39 }
 0xaac   :  { %v1584_v58 = vadd.f32 %v1582_v56, %v4535_v46  ;;  %v4955_v56 = vld [vmem:[%s5296_s11] ss:$0 sm:$0xff] }
 0xaad   :  { %v1585_v59 = vadd.f32 %v1583_v57, %v4533_v43 }
 0xaae   :  { %3940 = vtanh.f32 %v1584_v58 }
 0xaaf   :  { %3942 = vtanh.f32 %v1585_v59 }
 0xabb   :  { %v3941_v23 = vpop.eup %3940 }
 0xabc   :  { %v3943_v38 = vpop.eup %3942  ;;  %1592 = vrot.lane.b32.xlu1 %v3941_v23, %s4065_s30 }
 0xabd   :  { %1594 = vrot.lane.b32.xlu0 %v3943_v38, %s4065_s30 }
 0xafa   :  { %v1558_v60 = vpop.permute.xlu1 %1557  ;;  %v1560_v34 = vpop.permute.xlu0 %1559 }
 0xafb   :  { %v1563_v35 = vadd.f32 %v1558_v60, %v4520_v12  ;;  %v1564_v61 = vadd.f32 %v1560_v34, %v4523_v15 }
 0xafd   :  { %v3034_v37 = vmul.f32 -1.442695, %v1563_v35  ;;  %v3035_v62 = vmul.f32 -1.442695, %v1564_v61 }
 0xaff   :  { %3944 = vpow2.f32 %v3034_v37 }
 0xb00   :  { %3946 = vpow2.f32 %v3035_v62 }
 0xb0c   :  { %v3945_v40 = vpop.eup %3944 }
 0xb0d   :  { %v3947_v41 = vpop.eup %3946  ;;  %v1571_v45 = vadd.f32 1.0, %v3945_v40 }
 0xb0e   :  { %v1572_v47 = vadd.f32 1.0, %v3947_v41 }
 0xb0f   :  { %3948 = vrcp.f32 %v1571_v45 }
 0xb10   :  { %3950 = vrcp.f32 %v1572_v47 }
 0xb1c   :  { %v3949_v20 = vpop.eup %3948 }
 0xb1d   :  { %v3951_v21 = vpop.eup %3950  ;;  %v1588_v53 = vsub.f32 1.0, %v3949_v20  ;;  %v1604_v3 = vmul.f32 %v3949_v20, %v1600_v52 }
 0xb1e   :  { %v1589_v0 = vsub.f32 1.0, %v3951_v21  ;;  %v1605_v6 = vmul.f32 %v3951_v21, %v1601_v63 }
 0xb2e   :  { %v1593_v1 = vpop.permute.xlu1 %1592 }
 0xb2f   :  { %v1595_v2 = vpop.permute.xlu0 %1594  ;;  %v1598_v5 = vmul.f32 %v1593_v1, %v1588_v53 }
 0xb30   :  { %v1599_v7 = vmul.f32 %v1595_v2, %v1589_v0 }
 0xb31   :  { %v4826_v8 = vadd.f32 %v1604_v3, %v1598_v5 }
 0xb32   :  { %v4828_v4 = vadd.f32 %v1605_v6, %v1599_v7 }
 0xb33   :  { %v1610_v9 = vrot.slane %v4826_v8, 3 }
 0xb34   :  { %v1611_v11 = vrot.slane %v4828_v4, 2 }
 0xb36   :  { %v1612_v42 = vsel %vm740_vm3, %v1611_v11, %v1610_v9 }
 0xb37   :  { %1613 = vrot.lane.b32.xlu1 %v1612_v42, %s4065_s30 }
 0xba9   :  { %v1614_v44 = vpop.permute.xlu1 %1613 }
 0xbaa   :  { %3611 = vmatmul.mubr.msk.f32.vlgmr.msra.gmra.mxu0 %vm274_vm1, %v1614_v44  ;;  %3630 = vmatmul.mubr.msk.f32.vlgmr.msra.gmra.mxu1 %vm274_vm1, %v1614_v44 }
 0xbab   :  { %3633 = vmatpush3.msra.mxu0 %v4435_v48  ;;  %3648 = vmatprep.mubr.msk.f32.mxu0 %vm4064_vm2, %v4063_v54  ;;  %v4852_v48 = vld [vmem:[%s5295_s7 + $0x30] sm:$0xff] }
 0xbac   :  { %3634 = vmatprep.subr.mxu0 %v4063_v54  ;;  %3652 = vmatpush3.msra.mxu1 %v4843_v13 }
 0xbad   :  { %3635 = vmatpush3.msra.mxu0 %v4443_v49  ;;  %3653 = vmatprep.subr.mxu1 %v4063_v54  ;;  %v4861_v49 = vld [vmem:[%s5295_s7 + $0x28] sm:$0xff] }
 0xbae   :  { %3636 = vmatprep.subr.mxu0 %v4063_v54  ;;  %3654 = vmatpush3.msra.mxu1 %v4852_v48 }
 0xbaf   :  { %3637 = vmatpush3.msra.mxu0 %v4452_v50  ;;  %3655 = vmatprep.subr.mxu1 %v4063_v54  ;;  %v4870_v50 = vld [vmem:[%s5295_s7 + $0x20] sm:$0xff] }
 0xbb0   :  { %3638 = vmatprep.subr.mxu0 %v4063_v54  ;;  %3656 = vmatpush3.msra.mxu1 %v4861_v49 }
 0xbb1   :  { %3639 = vmatpush3.msra.mxu0 %v4459_v51  ;;  %3657 = vmatprep.subr.mxu1 %v4063_v54  ;;  %v4884_v51 = vld [vmem:[%s5295_s7 + $0x18] sm:$0xff] }
 0xbb2   :  { %3640 = vmatprep.subr.mxu0 %v4063_v54  ;;  %3658 = vmatpush3.msra.mxu1 %v4870_v50 }
 0xbb3   :  { %3641 = vmatpush3.msra.mxu0 %v4876_v33  ;;  %3659 = vmatprep.subr.mxu1 %v4063_v54 }
 0xbb4   :  { %3642 = vmatprep.subr.mxu0 %v4063_v54  ;;  %3660 = vmatpush3.msra.mxu1 %v4884_v51 }
 0xbb5   :  { %3643 = vmatpush3.msra.mxu0 %v4890_v14  ;;  %3661 = vmatprep.subr.mxu1 %v4063_v54 }
 0xbb6   :  { %3644 = vmatprep.subr.mxu0 %v4063_v54  ;;  %3662 = vmatpush3.msra.mxu1 %v4898_v16 }
 0xbb7   :  { %3645 = vmatpush3.msra.mxu0 %v4904_v17  ;;  %3663 = vmatprep.subr.mxu1 %v4063_v54 }
 0xbb8   :  { %3646 = vmatprep.subr.mxu0 %v4063_v54  ;;  %3664 = vmatpush3.msra.mxu1 %v4912_v18 }
 0xbb9   :  { %3647 = vmatpush3.msra.mxu0 %v4918_v19  ;;  %3665 = vmatprep.subr.mxu1 %v4063_v54 }
 0xbba   :  { %3649 = vmatmul.mubr.msk.f32.vlgmr.msra.gmra.mxu0 %vm274_vm1, %v1614_v44  ;;  %3670 = vmatprep.subr.mxu0 %v4063_v54 }
 0xbbb   :  { %3671 = vmatpush3.msra.mxu0 %v4752_v25  ;;  %3666 = vmatpush3.msra.mxu1 %v4928_v22 }
 0xbbc   :  { %3672 = vmatprep.subr.mxu0 %v4063_v54  ;;  %3667 = vmatprep.mubr.msk.f32.mxu1 %vm4064_vm2, %v4063_v54 }
 0xbbd   :  { %3673 = vmatpush3.msra.mxu0 %v4762_v26  ;;  %3686 = vmatprep.mubr.msk.f32.mxu0 %vm4064_vm2, %v4063_v54 }
 0xbbe   :  { %3674 = vmatprep.subr.mxu0 %v4063_v54  ;;  %3689 = vmatprep.subr.mxu1 %v4063_v54 }
 0xbbf   :  { %3675 = vmatpush3.msra.mxu0 %v4772_v27 }
 0xbc0   :  { %3676 = vmatprep.subr.mxu0 %v4063_v54 }
 0xbc1   :  { %3677 = vmatpush3.msra.mxu0 %v4779_v28 }
 0xbc2   :  { %3678 = vmatprep.subr.mxu0 %v4063_v54 }
 0xbc3   :  { %3679 = vmatpush3.msra.mxu0 %v4786_v29 }
 0xbc4   :  { %3680 = vmatprep.subr.mxu0 %v4063_v54 }
 0xbc5   :  { %3681 = vmatpush3.msra.mxu0 %v4793_v30 }
 0xbc6   :  { %3682 = vmatprep.subr.mxu0 %v4063_v54 }
 0xbc7   :  { %3683 = vmatpush3.msra.mxu0 %v4800_v31 }
 0xbc8   :  { %3684 = vmatprep.subr.mxu0 %v4063_v54 }
 0xbc9   :  { %3685 = vmatpush3.msra.mxu0 %v4807_v32 }
 0xbca   :  { %3708 = vmatprep.subr.mxu0 %v4063_v54 }
 0xc6a   :  { %v1683_v24 = vpop.f32.mrf.mxu0  ;;  %v1753_v39 = vpop.f32.mrf.mxu1 }
 0xc6b   :  { %v1684_v55 = vadd.f32 %v4518_v10, %v1683_v24  ;;  %v1754_v57 = vadd.f32 %v4955_v56, %v1753_v39 }
 0xc6c   :  { %v3612_v58 = vpop.f32.mrf.mxu0  ;;  %v3631_v59 = vpop.f32.mrf.mxu1 }
 0xc6d   :  { %v1828_v23 = vrot.slane %v1684_v55, 4  ;;  %v1829_v38 = vrot.slane %v1684_v55, 5  ;;  %v1847_v60 = vrot.slane %v1754_v57, 4  ;;  %v1848_v34 = vrot.slane %v1754_v57, 5 }
 0xc6f   :  { %v1832_v35 = vadd.f32 %v1828_v23, %v4520_v12  ;;  %v1833_v61 = vadd.f32 %v1829_v38, %v4523_v15  ;;  %1851 = vrot.lane.b32.xlu1 %v1848_v34, %s4065_s30  ;;  %1849 = vrot.lane.b32.xlu0 %v1847_v60, %s4065_s30  ;;  %v1892_v38 = vrot.slane %v4826_v8, 7  ;;  %v1893_v34 = vrot.slane %v4828_v4, 7 }
 0xc71   :  { %v3039_v10 = vmul.f32 -1.442695, %v1832_v35  ;;  %v3040_v37 = vmul.f32 -1.442695, %v1833_v61 }
 0xc73   :  { %3952 = vpow2.f32 %v3039_v10 }
 0xc74   :  { %3954 = vpow2.f32 %v3040_v37 }
 0xc7a   :  { %v1823_v62 = vpop.f32.mrf.mxu0 }
 0xc7b   :  { %v1824_v21 = vadd.f32 %v4530_v36, %v1823_v62 }
 0xc7c   :  { %v3650_v40 = vpop.f32.mrf.mxu0 }
 0xc7d   :  { %v1870_v52 = vrot.slane %v1824_v21, 4  ;;  %v1871_v63 = vrot.slane %v1824_v21, 5 }
 0xc80   :  { %v3953_v41 = vpop.eup %3952 }
 0xc81   :  { %v3955_v45 = vpop.eup %3954  ;;  %v1840_v47 = vadd.f32 1.0, %v3953_v41 }
 0xc82   :  { %v1841_v20 = vadd.f32 1.0, %v3955_v45 }
 0xc83   :  { %3956 = vrcp.f32 %v1840_v47 }
 0xc84   :  { %3958 = vrcp.f32 %v1841_v20 }
 0xc90   :  { %v3957_v53 = vpop.eup %3956 }
 0xc91   :  { %v3959_v0 = vpop.eup %3958  ;;  %v1874_v1 = vmul.f32 %v3957_v53, %v1870_v52  ;;  %v4984_v52 = vld [vmem:[%s5297_s9 + $0x38] sm:$0xff]  ;;  %v4994_v53 = vld [vmem:[%s5297_s9 + $0x30] sm:$0xff] }
 0xc92   :  { %v1875_v2 = vmul.f32 %v3959_v0, %v1871_v63  ;;  %v5003_v63 = vld [vmem:[%s5297_s9 + $0x28] sm:$0xff]  ;;  %v5012_v0 = vld [vmem:[%s5297_s9 + $0x20] sm:$0xff] }
 0xc93   :  { %v1876_v3 = vadd.f32 %v1874_v1, %v4535_v46 }
 0xc94   :  { %v1877_v5 = vadd.f32 %v1875_v2, %v4533_v43 }
 0xc95   :  { %3960 = vtanh.f32 %v1876_v3  ;;  %v5059_v3 = vld [vmem:[%s5299_s10] ss:$0 sm:$0xff] }
 0xc96   :  { %3962 = vtanh.f32 %v1877_v5 }
 0xca2   :  { %v3961_v6 = vpop.eup %3960 }
 0xca3   :  { %v3963_v7 = vpop.eup %3962  ;;  %1884 = vrot.lane.b32.xlu0 %v3961_v6, %s4065_s30 }
 0xca4   :  { %1886 = vrot.lane.b32.xlu1 %v3963_v7, %s4065_s30 }
 0xce1   :  { %v1850_v9 = vpop.permute.xlu0 %1849  ;;  %v1852_v36 = vpop.permute.xlu1 %1851 }
 0xce2   :  { %v1855_v11 = vadd.f32 %v1850_v9, %v4520_v12  ;;  %v1856_v42 = vadd.f32 %v1852_v36, %v4523_v15 }
 0xce4   :  { %v3041_v44 = vmul.f32 -1.442695, %v1855_v11  ;;  %v3042_v24 = vmul.f32 -1.442695, %v1856_v42 }
 0xce6   :  { %3964 = vpow2.f32 %v3041_v44 }
 0xce7   :  { %3966 = vpow2.f32 %v3042_v24 }
 0xcf3   :  { %v3965_v39 = vpop.eup %3964 }
 0xcf4   :  { %v3967_v55 = vpop.eup %3966  ;;  %v1863_v57 = vadd.f32 1.0, %v3965_v39 }
 0xcf5   :  { %v1864_v58 = vadd.f32 1.0, %v3967_v55 }
 0xcf6   :  { %3968 = vrcp.f32 %v1863_v57 }
 0xcf7   :  { %3970 = vrcp.f32 %v1864_v58 }
 0xd03   :  { %v3969_v59 = vpop.eup %3968 }
 0xd04   :  { %v3971_v23 = vpop.eup %3970  ;;  %v1880_v60 = vsub.f32 1.0, %v3969_v59  ;;  %v1896_v37 = vmul.f32 %v3969_v59, %v1892_v38 }
 0xd05   :  { %v1881_v35 = vsub.f32 1.0, %v3971_v23  ;;  %v1897_v40 = vmul.f32 %v3971_v23, %v1893_v34 }
 0xd15   :  { %v1885_v61 = vpop.permute.xlu0 %1884 }
 0xd16   :  { %v1887_v10 = vpop.permute.xlu1 %1886  ;;  %v1890_v62 = vmul.f32 %v1885_v61, %v1880_v60 }
 0xd17   :  { %v1891_v41 = vmul.f32 %v1887_v10, %v1881_v35  ;;  %v5070_v35 = vld [vmem:[%s5300_s12] ss:$0 sm:$0xff] }
 0xd18   :  { %v4971_v45 = vadd.f32 %v1896_v37, %v1890_v62 }
 0xd19   :  { %v4973_v47 = vadd.f32 %v1897_v40, %v1891_v41 }
 0xd1a   :  { %v1902_v20 = vrot.slane %v4971_v45, 4 }
 0xd1b   :  { %v1903_v21 = vrot.slane %v4973_v47, 3 }
 0xd1d   :  { %v1904_v8 = vsel %vm740_vm3, %v1903_v21, %v1902_v20 }
 0xd1e   :  { %1905 = vrot.lane.b32.xlu0 %v1904_v8, %s4065_s30 }
 0xd90   :  { %v1906_v4 = vpop.permute.xlu0 %1905 }
 0xd91   :  { %3668 = vmatmul.mubr.msk.f32.vlgmr.msra.gmra.mxu1 %vm274_vm1, %v1906_v4  ;;  %3687 = vmatmul.mubr.msk.f32.vlgmr.msra.gmra.mxu0 %vm274_vm1, %v1906_v4 }
 0xd92   :  { %3690 = vmatpush3.msra.mxu1 %v4984_v52  ;;  %3705 = vmatprep.mubr.msk.f32.mxu1 %vm4064_vm2, %v4063_v54 }
 0xd93   :  { %3691 = vmatprep.subr.mxu1 %v4063_v54  ;;  %3709 = vmatpush3.msra.mxu0 %v4843_v13 }
 0xd94   :  { %3692 = vmatpush3.msra.mxu1 %v4994_v53  ;;  %3710 = vmatprep.subr.mxu0 %v4063_v54 }
 0xd95   :  { %3693 = vmatprep.subr.mxu1 %v4063_v54  ;;  %3711 = vmatpush3.msra.mxu0 %v4852_v48 }
 0xd96   :  { %3694 = vmatpush3.msra.mxu1 %v5003_v63  ;;  %3712 = vmatprep.subr.mxu0 %v4063_v54 }
 0xd97   :  { %3695 = vmatprep.subr.mxu1 %v4063_v54  ;;  %3713 = vmatpush3.msra.mxu0 %v4861_v49 }
 0xd98   :  { %3696 = vmatpush3.msra.mxu1 %v5012_v0  ;;  %3714 = vmatprep.subr.mxu0 %v4063_v54 }
 0xd99   :  { %3697 = vmatprep.subr.mxu1 %v4063_v54  ;;  %3715 = vmatpush3.msra.mxu0 %v4870_v50 }
 0xd9a   :  { %3698 = vmatpush3.msra.mxu1 %v4876_v33  ;;  %3716 = vmatprep.subr.mxu0 %v4063_v54 }
 0xd9b   :  { %3699 = vmatprep.subr.mxu1 %v4063_v54  ;;  %3717 = vmatpush3.msra.mxu0 %v4884_v51 }
 0xd9c   :  { %3700 = vmatpush3.msra.mxu1 %v4890_v14  ;;  %3718 = vmatprep.subr.mxu0 %v4063_v54 }
 0xd9d   :  { %3701 = vmatprep.subr.mxu1 %v4063_v54  ;;  %3719 = vmatpush3.msra.mxu0 %v4898_v16 }
 0xd9e   :  { %3702 = vmatpush3.msra.mxu1 %v4904_v17  ;;  %3720 = vmatprep.subr.mxu0 %v4063_v54 }
 0xd9f   :  { %3703 = vmatprep.subr.mxu1 %v4063_v54  ;;  %3721 = vmatpush3.msra.mxu0 %v4912_v18 }
 0xda0   :  { %3704 = vmatpush3.msra.mxu1 %v4918_v19  ;;  %3722 = vmatprep.subr.mxu0 %v4063_v54 }
 0xda1   :  { %3706 = vmatmul.mubr.msk.f32.vlgmr.msra.gmra.mxu1 %vm274_vm1, %v1906_v4  ;;  %3727 = vmatprep.subr.mxu1 %v4063_v54 }
 0xda2   :  { %3728 = vmatpush3.msra.mxu1 %v4752_v25  ;;  %3723 = vmatpush3.msra.mxu0 %v4928_v22 }
 0xda3   :  { %3729 = vmatprep.subr.mxu1 %v4063_v54  ;;  %3724 = vmatprep.mubr.msk.f32.mxu0 %vm4064_vm2, %v4063_v54 }
 0xda4   :  { %3730 = vmatpush3.msra.mxu1 %v4762_v26  ;;  %3743 = vmatprep.mubr.msk.f32.mxu1 %vm4064_vm2, %v4063_v54 }
 0xda5   :  { %3731 = vmatprep.subr.mxu1 %v4063_v54  ;;  %3746 = vmatprep.subr.mxu0 %v4063_v54 }
 0xda6   :  { %3732 = vmatpush3.msra.mxu1 %v4772_v27 }
 0xda7   :  { %3733 = vmatprep.subr.mxu1 %v4063_v54 }
 0xda8   :  { %3734 = vmatpush3.msra.mxu1 %v4779_v28 }
 0xda9   :  { %3735 = vmatprep.subr.mxu1 %v4063_v54 }
 0xdaa   :  { %3736 = vmatpush3.msra.mxu1 %v4786_v29 }
 0xdab   :  { %3737 = vmatprep.subr.mxu1 %v4063_v54 }
 0xdac   :  { %3738 = vmatpush3.msra.mxu1 %v4793_v30 }
 0xdad   :  { %3739 = vmatprep.subr.mxu1 %v4063_v54 }
 0xdae   :  { %3740 = vmatpush3.msra.mxu1 %v4800_v31 }
 0xdaf   :  { %3741 = vmatprep.subr.mxu1 %v4063_v54 }
 0xdb0   :  { %3742 = vmatpush3.msra.mxu1 %v4807_v32 }
 0xdb1   :  { %3765 = vmatprep.subr.mxu1 %v4063_v54 }
 0xe51   :  { %v1975_v1 = vpop.f32.mrf.mxu1  ;;  %v2045_v2 = vpop.f32.mrf.mxu0 }
 0xe52   :  { %v1976_v5 = vadd.f32 %v5059_v3, %v1975_v1  ;;  %v2046_v6 = vadd.f32 %v4955_v56, %v2045_v2 }
 0xe53   :  { %v3669_v7 = vpop.f32.mrf.mxu1  ;;  %v3688_v9 = vpop.f32.mrf.mxu0 }
 0xe54   :  { %v2120_v36 = vrot.slane %v1976_v5, 3  ;;  %v2121_v11 = vrot.slane %v1976_v5, 4  ;;  %v2139_v42 = vrot.slane %v2046_v6, 3  ;;  %v2140_v44 = vrot.slane %v2046_v6, 4 }
 0xe56   :  { %v2124_v24 = vadd.f32 %v2120_v36, %v4520_v12  ;;  %v2125_v39 = vadd.f32 %v2121_v11, %v4523_v15  ;;  %2143 = vrot.lane.b32.xlu0 %v2140_v44, %s4065_s30  ;;  %2141 = vrot.lane.b32.xlu1 %v2139_v42, %s4065_s30 }
 0xe58   :  { %v3046_v55 = vmul.f32 -1.442695, %v2124_v24  ;;  %v3047_v57 = vmul.f32 -1.442695, %v2125_v39 }
 0xe5a   :  { %3972 = vpow2.f32 %v3046_v55 }
 0xe5b   :  { %3974 = vpow2.f32 %v3047_v57  ;;  %v2184_v57 = vrot.slane %v4971_v45, 7 }
 0xe61   :  { %v2115_v58 = vpop.f32.mrf.mxu1 }
 0xe62   :  { %v2116_v61 = vadd.f32 %v5070_v35, %v2115_v58 }
 0xe63   :  { %v3707_v59 = vpop.f32.mrf.mxu1 }
 0xe64   :  { %v2162_v10 = vrot.slane %v2116_v61, 3  ;;  %v2163_v62 = vrot.slane %v2116_v61, 4  ;;  %v2185_v59 = vrot.slane %v4973_v47, 7 }
 0xe67   :  { %v3973_v23 = vpop.eup %3972 }
 0xe68   :  { %v3975_v38 = vpop.eup %3974  ;;  %v2132_v60 = vadd.f32 1.0, %v3973_v23 }
 0xe69   :  { %v2133_v34 = vadd.f32 1.0, %v3975_v38 }
 0xe6a   :  { %3976 = vrcp.f32 %v2132_v60 }
 0xe6b   :  { %3978 = vrcp.f32 %v2133_v34 }
 0xe77   :  { %v3977_v37 = vpop.eup %3976 }
 0xe78   :  { %v3979_v40 = vpop.eup %3978  ;;  %v2166_v41 = vmul.f32 %v3977_v37, %v2162_v10 }
 0xe79   :  { %v2167_v20 = vmul.f32 %v3979_v40, %v2163_v62 }
 0xe7a   :  { %v2168_v21 = vadd.f32 %v2166_v41, %v4535_v46 }
 0xe7b   :  { %v2169_v8 = vadd.f32 %v2167_v20, %v4533_v43 }
 0xe7c   :  { %3980 = vtanh.f32 %v2168_v21 }
 0xe7d   :  { %3982 = vtanh.f32 %v2169_v8 }
 0xe89   :  { %v3981_v4 = vpop.eup %3980 }
 0xe8a   :  { %v3983_v1 = vpop.eup %3982  ;;  %2176 = vrot.lane.b32.xlu1 %v3981_v4, %s4065_s30 }
 0xe8b   :  { %2178 = vrot.lane.b32.xlu0 %v3983_v1, %s4065_s30 }
 0xec8   :  { %v2142_v2 = vpop.permute.xlu1 %2141  ;;  %v2144_v5 = vpop.permute.xlu0 %2143 }
 0xec9   :  { %v2147_v6 = vadd.f32 %v2142_v2, %v4520_v12  ;;  %v2148_v7 = vadd.f32 %v2144_v5, %v4523_v15 }
 0xecb   :  { %v3048_v9 = vmul.f32 -1.442695, %v2147_v6  ;;  %v3049_v36 = vmul.f32 -1.442695, %v2148_v7 }
 0xecd   :  { %3984 = vpow2.f32 %v3048_v9 }
 0xece   :  { %3986 = vpow2.f32 %v3049_v36 }
 0xeda   :  { %v3985_v11 = vpop.eup %3984 }
 0xedb   :  { %v3987_v42 = vpop.eup %3986  ;;  %v2155_v44 = vadd.f32 1.0, %v3985_v11 }
 0xedc   :  { %v2156_v24 = vadd.f32 1.0, %v3987_v42 }
 0xedd   :  { %3988 = vrcp.f32 %v2155_v44 }
 0xede   :  { %3990 = vrcp.f32 %v2156_v24 }
 0xeea   :  { %v3989_v39 = vpop.eup %3988 }
 0xeeb   :  { %v3991_v55 = vpop.eup %3990  ;;  %v2172_v58 = vsub.f32 1.0, %v3989_v39  ;;  %v2188_v34 = vmul.f32 %v3989_v39, %v2184_v57 }
 0xeec   :  { %v2173_v23 = vsub.f32 1.0, %v3991_v55  ;;  %v2189_v10 = vmul.f32 %v3991_v55, %v2185_v59 }
 0xefc   :  { %v2177_v38 = vpop.permute.xlu1 %2176 }
 0xefd   :  { %v2179_v60 = vpop.permute.xlu0 %2178  ;;  %v2182_v61 = vmul.f32 %v2177_v38, %v2172_v58 }
 0xefe   :  { %v2183_v37 = vmul.f32 %v2179_v60, %v2173_v23 }
 0xeff   :  { %v5081_v62 = vadd.f32 %v2188_v34, %v2182_v61 }
 0xf00   :  { %v5083_v40 = vadd.f32 %v2189_v10, %v2183_v37 }
 0xf01   :  { %v2194_v41 = vrot.slane %v5081_v62, 5 }
 0xf02   :  { %v2195_v20 = vrot.slane %v5083_v40, 4 }
 0xf04   :  { %v2196_v45 = vsel %vm740_vm3, %v2195_v20, %v2194_v41  ;;  %v2476_v20 = vrot.slane %v5081_v62, 7 }
 0xf05   :  { %2197 = vrot.lane.b32.xlu1 %v2196_v45, %s4065_s30 }
 0xf77   :  { %v2198_v47 = vpop.permute.xlu1 %2197 }
 0xf78   :  { %3725 = vmatmul.mubr.msk.f32.vlgmr.msra.gmra.mxu0 %vm274_vm1, %v2198_v47  ;;  %3744 = vmatmul.mubr.msk.f32.vlgmr.msra.gmra.mxu1 %vm274_vm1, %v2198_v47 }
 0xf79   :  { %3747 = vmatpush3.msra.mxu0 %v4984_v52  ;;  %3762 = vmatprep.mubr.msk.f32.mxu0 %vm4064_vm2, %v4063_v54 }
 0xf7a   :  { %3748 = vmatprep.subr.mxu0 %v4063_v54  ;;  %3766 = vmatpush3.msra.mxu1 %v4843_v13 }
 0xf7b   :  { %3749 = vmatpush3.msra.mxu0 %v4994_v53  ;;  %3767 = vmatprep.subr.mxu1 %v4063_v54 }
 0xf7c   :  { %3750 = vmatprep.subr.mxu0 %v4063_v54  ;;  %3768 = vmatpush3.msra.mxu1 %v4852_v48 }
 0xf7d   :  { %3751 = vmatpush3.msra.mxu0 %v5003_v63  ;;  %3769 = vmatprep.subr.mxu1 %v4063_v54 }
 0xf7e   :  { %3752 = vmatprep.subr.mxu0 %v4063_v54  ;;  %3770 = vmatpush3.msra.mxu1 %v4861_v49 }
 0xf7f   :  { %3753 = vmatpush3.msra.mxu0 %v5012_v0  ;;  %3771 = vmatprep.subr.mxu1 %v4063_v54 }
 0xf80   :  { %3754 = vmatprep.subr.mxu0 %v4063_v54  ;;  %3772 = vmatpush3.msra.mxu1 %v4870_v50 }
 0xf81   :  { %3755 = vmatpush3.msra.mxu0 %v4876_v33  ;;  %3773 = vmatprep.subr.mxu1 %v4063_v54 }
 0xf82   :  { %3756 = vmatprep.subr.mxu0 %v4063_v54  ;;  %3774 = vmatpush3.msra.mxu1 %v4884_v51 }
 0xf83   :  { %3757 = vmatpush3.msra.mxu0 %v4890_v14  ;;  %3775 = vmatprep.subr.mxu1 %v4063_v54 }
 0xf84   :  { %3758 = vmatprep.subr.mxu0 %v4063_v54  ;;  %3776 = vmatpush3.msra.mxu1 %v4898_v16 }
 0xf85   :  { %3759 = vmatpush3.msra.mxu0 %v4904_v17  ;;  %3777 = vmatprep.subr.mxu1 %v4063_v54 }
 0xf86   :  { %3760 = vmatprep.subr.mxu0 %v4063_v54  ;;  %3778 = vmatpush3.msra.mxu1 %v4912_v18 }
 0xf87   :  { %3761 = vmatpush3.msra.mxu0 %v4918_v19  ;;  %3779 = vmatprep.subr.mxu1 %v4063_v54 }
 0xf88   :  { %3763 = vmatmul.mubr.msk.f32.vlgmr.msra.gmra.mxu0 %vm274_vm1, %v2198_v47  ;;  %3784 = vmatprep.subr.mxu0 %v4063_v54  ;;  %v2477_v47 = vrot.slane %v5083_v40, 7 }
 0xf89   :  { %3785 = vmatpush3.msra.mxu0 %v4752_v25  ;;  %3780 = vmatpush3.msra.mxu1 %v4928_v22 }
 0xf8a   :  { %3786 = vmatprep.subr.mxu0 %v4063_v54  ;;  %3781 = vmatprep.mubr.msk.f32.mxu1 %vm4064_vm2, %v4063_v54 }
 0xf8b   :  { %3787 = vmatpush3.msra.mxu0 %v4762_v26  ;;  %3800 = vmatprep.mubr.msk.f32.mxu0 %vm4064_vm2, %v4063_v54 }
 0xf8c   :  { %3788 = vmatprep.subr.mxu0 %v4063_v54  ;;  %3803 = vmatprep.subr.mxu1 %v4063_v54 }
 0xf8d   :  { %3789 = vmatpush3.msra.mxu0 %v4772_v27 }
 0xf8e   :  { %3790 = vmatprep.subr.mxu0 %v4063_v54 }
 0xf8f   :  { %3791 = vmatpush3.msra.mxu0 %v4779_v28 }
 0xf90   :  { %3792 = vmatprep.subr.mxu0 %v4063_v54 }
 0xf91   :  { %3793 = vmatpush3.msra.mxu0 %v4786_v29 }
 0xf92   :  { %3794 = vmatprep.subr.mxu0 %v4063_v54 }
 0xf93   :  { %3795 = vmatpush3.msra.mxu0 %v4793_v30 }
 0xf94   :  { %3796 = vmatprep.subr.mxu0 %v4063_v54 }
 0xf95   :  { %3797 = vmatpush3.msra.mxu0 %v4800_v31 }
 0xf96   :  { %3798 = vmatprep.subr.mxu0 %v4063_v54 }
 0xf97   :  { %3799 = vmatpush3.msra.mxu0 %v4807_v32 }
 0xf98   :  { %3822 = vmatprep.subr.mxu0 %v4063_v54 }
0x1038   :  { %v2267_v25 = vpop.f32.mrf.mxu0  ;;  %v2337_v26 = vpop.f32.mrf.mxu1 }
0x1039   :  { %v2268_v27 = vadd.f32 %v5059_v3, %v2267_v25  ;;  %v2338_v28 = vadd.f32 %v4955_v56, %v2337_v26 }
0x103a   :  { %v3726_v29 = vpop.f32.mrf.mxu0  ;;  %v3745_v13 = vpop.f32.mrf.mxu1 }
0x103b   :  { %v2412_v48 = vrot.slane %v2268_v27, 2  ;;  %v2413_v30 = vrot.slane %v2268_v27, 3  ;;  %v2431_v49 = vrot.slane %v2338_v28, 2  ;;  %v2432_v50 = vrot.slane %v2338_v28, 3 }
0x103d   :  { %v2416_v31 = vadd.f32 %v2412_v48, %v4520_v12  ;;  %v2417_v51 = vadd.f32 %v2413_v30, %v4523_v15  ;;  %2435 = vrot.lane.b32.xlu1 %v2432_v50, %s4065_s30  ;;  %2433 = vrot.lane.b32.xlu0 %v2431_v49, %s4065_s30 }
0x103f   :  { %v3053_v32 = vmul.f32 -1.442695, %v2416_v31  ;;  %v3054_v16 = vmul.f32 -1.442695, %v2417_v51 }
0x1041   :  { %3992 = vpow2.f32 %v3053_v32 }
0x1042   :  { %3994 = vpow2.f32 %v3054_v16 }
0x1048   :  { %v2407_v18 = vpop.f32.mrf.mxu0 }
0x1049   :  { %v2408_v2 = vadd.f32 %v5070_v35, %v2407_v18 }
0x104a   :  { %v3764_v22 = vpop.f32.mrf.mxu0 }
0x104b   :  { %v2454_v5 = vrot.slane %v2408_v2, 2  ;;  %v2455_v7 = vrot.slane %v2408_v2, 3 }
0x104e   :  { %v3993_v21 = vpop.eup %3992 }
0x104f   :  { %v3995_v8 = vpop.eup %3994  ;;  %v2424_v4 = vadd.f32 1.0, %v3993_v21 }
0x1050   :  { %v2425_v1 = vadd.f32 1.0, %v3995_v8 }
0x1051   :  { %3996 = vrcp.f32 %v2424_v4 }
0x1052   :  { %3998 = vrcp.f32 %v2425_v1 }
0x105e   :  { %v3997_v6 = vpop.eup %3996 }
0x105f   :  { %v3999_v9 = vpop.eup %3998  ;;  %v2458_v36 = vmul.f32 %v3997_v6, %v2454_v5 }
0x1060   :  { %v2459_v11 = vmul.f32 %v3999_v9, %v2455_v7 }
0x1061   :  { %v2460_v42 = vadd.f32 %v2458_v36, %v4535_v46 }
0x1062   :  { %v2461_v44 = vadd.f32 %v2459_v11, %v4533_v43 }
0x1063   :  { %4000 = vtanh.f32 %v2460_v42 }
0x1064   :  { %4002 = vtanh.f32 %v2461_v44 }
0x1070   :  { %v4001_v24 = vpop.eup %4000 }
0x1071   :  { %v4003_v39 = vpop.eup %4002  ;;  %2468 = vrot.lane.b32.xlu0 %v4001_v24, %s4065_s30 }
0x1072   :  { %2470 = vrot.lane.b32.xlu1 %v4003_v39, %s4065_s30  ;;  %v2783_v39 = vld [vmem:[%s5301_s13 + $0x38] sm:$0xff] }
0x10af   :  { %v2434_v55 = vpop.permute.xlu0 %2433  ;;  %v2436_v57 = vpop.permute.xlu1 %2435 }
0x10b0   :  { %v2439_v58 = vadd.f32 %v2434_v55, %v4520_v12  ;;  %v2440_v59 = vadd.f32 %v2436_v57, %v4523_v15  ;;  %v2781_v55 = vld [vmem:[%s5301_s13 + $0x28] sm:$0xff]  ;;  %v2780_v57 = vld [vmem:[%s5301_s13 + $0x20] sm:$0xff] }
0x10b2   :  { %v3055_v23 = vmul.f32 -1.442695, %v2439_v58  ;;  %v3056_v38 = vmul.f32 -1.442695, %v2440_v59  ;;  %v2779_v58 = vld [vmem:[%s5301_s13 + $0x18] sm:$0xff]  ;;  %v2778_v59 = vld [vmem:[%s5301_s13 + $0x10] sm:$0xff] }
0x10b4   :  { %4004 = vpow2.f32 %v3055_v23  ;;  %v2777_v23 = vld [vmem:[%s5301_s13 + $0x8] sm:$0xff] }
0x10b5   :  { %4006 = vpow2.f32 %v3056_v38  ;;  %v2776_v38 = vld [vmem:[%s5301_s13] sm:$0xff] }
0x10c1   :  { %v4005_v60 = vpop.eup %4004 }
0x10c2   :  { %v4007_v34 = vpop.eup %4006  ;;  %v2447_v61 = vadd.f32 1.0, %v4005_v60 }
0x10c3   :  { %v2448_v10 = vadd.f32 1.0, %v4007_v34 }
0x10c4   :  { %4008 = vrcp.f32 %v2447_v61 }
0x10c5   :  { %4010 = vrcp.f32 %v2448_v10 }
0x10d1   :  { %v4009_v37 = vpop.eup %4008 }
0x10d2   :  { %v4011_v41 = vpop.eup %4010  ;;  %v2464_v45 = vsub.f32 1.0, %v4009_v37  ;;  %v2480_v28 = vmul.f32 %v4009_v37, %v2476_v20 }
0x10d3   :  { %v2465_v25 = vsub.f32 1.0, %v4011_v41  ;;  %v2481_v13 = vmul.f32 %v4011_v41, %v2477_v47 }
0x10e3   :  { %v2469_v26 = vpop.permute.xlu0 %2468 }
0x10e4   :  { %v2471_v27 = vpop.permute.xlu1 %2470  ;;  %v2474_v29 = vmul.f32 %v2469_v26, %v2464_v45 }
0x10e5   :  { %v2475_v48 = vmul.f32 %v2471_v27, %v2465_v25 }
0x10e6   :  { %v5161_v30 = vadd.f32 %v2480_v28, %v2474_v29 }
0x10e7   :  { %v5163_v49 = vadd.f32 %v2481_v13, %v2475_v48 }
0x10e8   :  { %v2486_v50 = vrot.slane %v5161_v30, 6  ;;  %v2768_v28 = vrot.slane %v5161_v30, 7  ;;  %v3064_v30 = vld [vmem:[%s5302_s14] ss:$0 sm:$0xff] }
0x10e9   :  { %v2487_v31 = vrot.slane %v5163_v49, 5  ;;  %v2769_v13 = vrot.slane %v5163_v49, 7 }
0x10eb   :  { %v2488_v62 = vsel %vm740_vm3, %v2487_v31, %v2486_v50 }
0x10ec   :  { %2489 = vrot.lane.b32.xlu0 %v2488_v62, %s4065_s30 }
0x115e   :  { %v2490_v40 = vpop.permute.xlu0 %2489 }
0x115f   :  { %3782 = vmatmul.mubr.msk.f32.vlgmr.msra.gmra.mxu1 %vm274_vm1, %v2490_v40  ;;  %3801 = vmatmul.mubr.msk.f32.vlgmr.msra.gmra.mxu0 %vm274_vm1, %v2490_v40 }
0x1160   :  { %3804 = vmatpush3.msra.mxu1 %v4984_v52  ;;  %3819 = vmatprep.mubr.msk.f32.mxu1 %vm4064_vm2, %v4063_v54 }
0x1161   :  { %3805 = vmatprep.subr.mxu1 %v4063_v54  ;;  %3838 = vmatprep.mubr.msk.f32.mxu0 %vm4064_vm2, %v4063_v54 }
0x1162   :  { %3806 = vmatpush3.msra.mxu1 %v4994_v53  ;;  %3823 = vmatpush3.msra.mxu0 %v2783_v39  ;;  %v2910_v39 = vld [vmem:[%s5303_s15 + $0x8] sm:$0xff] }
0x1163   :  { %3807 = vmatprep.subr.mxu1 %v4063_v54  ;;  %3824 = vmatprep.subr.mxu0 %v4063_v54 }
0x1164   :  { %3808 = vmatpush3.msra.mxu1 %v5003_v63 }
0x1165   :  { %3809 = vmatprep.subr.mxu1 %v4063_v54 }
0x1166   :  { %3810 = vmatpush3.msra.mxu1 %v5012_v0 }
0x1167   :  { %3811 = vmatprep.subr.mxu1 %v4063_v54 }
0x1168   :  { %3812 = vmatpush3.msra.mxu1 %v4876_v33 }
0x1169   :  { %3813 = vmatprep.subr.mxu1 %v4063_v54 }
0x116a   :  { %3814 = vmatpush3.msra.mxu1 %v4890_v14 }
0x116b   :  { %3815 = vmatprep.subr.mxu1 %v4063_v54 }
0x116c   :  { %3816 = vmatpush3.msra.mxu1 %v4904_v17 }
0x116d   :  { %3817 = vmatprep.subr.mxu1 %v4063_v54 }
0x116e   :  { %3818 = vmatpush3.msra.mxu1 %v4918_v19 }
0x116f   :  { %3820 = vmatmul.mubr.msk.f32.vlgmr.msra.gmra.mxu1 %vm274_vm1, %v2490_v40  ;;  %3841 = vmatprep.subr.mxu1 %v4063_v54 }
0x1170   :  { %3857 = vmatprep.mubr.msk.f32.mxu1 %vm4064_vm2, %v4063_v54 }
0x121f   :  { %v2559_v33 = vpop.f32.mrf.mxu1  ;;  %v2629_v52 = vpop.f32.mrf.mxu0 }
0x1220   :  { %v2560_v53 = vadd.f32 %v5059_v3, %v2559_v33  ;;  %v2630_v14 = vadd.f32 %v4955_v56, %v2629_v52 }
0x1221   :  { %v3783_v63 = vpop.f32.mrf.mxu1  ;;  %v3802_v0 = vpop.f32.mrf.mxu0 }
0x1222   :  { %v2704_v17 = vrot.slane %v2560_v53, 1  ;;  %v2705_v51 = vrot.slane %v2560_v53, 2  ;;  %v2723_v32 = vrot.slane %v2630_v14, 1  ;;  %v2724_v16 = vrot.slane %v2630_v14, 2 }
0x1224   :  { %v2708_v19 = vadd.f32 %v2704_v17, %v4520_v12  ;;  %v2709_v18 = vadd.f32 %v2705_v51, %v4523_v15  ;;  %2727 = vrot.lane.b32.xlu0 %v2724_v16, %s4065_s30  ;;  %2725 = vrot.lane.b32.xlu1 %v2723_v32, %s4065_s30 }
0x1226   :  { %v3060_v22 = vmul.f32 -1.442695, %v2708_v19  ;;  %v3061_v21 = vmul.f32 -1.442695, %v2709_v18 }
0x1228   :  { %4012 = vpow2.f32 %v3060_v22 }
0x1229   :  { %4014 = vpow2.f32 %v3061_v21 }
0x122f   :  { %v2699_v3 = vpop.f32.mrf.mxu1 }
0x1230   :  { %v2700_v5 = vadd.f32 %v5070_v35, %v2699_v3  ;;  %v2782_v35 = vld [vmem:[%s5301_s13 + $0x30] sm:$0xff] }
0x1231   :  { %v3821_v56 = vpop.f32.mrf.mxu1  ;;  %3825 = vmatpush3.msra.mxu0 %v2782_v35  ;;  %v2909_v35 = vld [vmem:[%s5303_s15] sm:$0xff] }
0x1232   :  { %v2746_v6 = vrot.slane %v2700_v5, 1  ;;  %v2747_v9 = vrot.slane %v2700_v5, 2  ;;  %3826 = vmatprep.subr.mxu0 %v4063_v54 }
0x1233   :  { %3827 = vmatpush3.msra.mxu0 %v2781_v55 }
0x1234   :  { %3828 = vmatprep.subr.mxu0 %v4063_v54 }
0x1235   :  { %v4013_v8 = vpop.eup %4012  ;;  %3829 = vmatpush3.msra.mxu0 %v2780_v57 }
0x1236   :  { %v4015_v4 = vpop.eup %4014  ;;  %v2716_v1 = vadd.f32 1.0, %v4013_v8  ;;  %3830 = vmatprep.subr.mxu0 %v4063_v54 }
0x1237   :  { %v2717_v2 = vadd.f32 1.0, %v4015_v4  ;;  %3831 = vmatpush3.msra.mxu0 %v2779_v58 }
0x1238   :  { %4016 = vrcp.f32 %v2716_v1  ;;  %3832 = vmatprep.subr.mxu0 %v4063_v54 }
0x1239   :  { %4018 = vrcp.f32 %v2717_v2  ;;  %3833 = vmatpush3.msra.mxu0 %v2778_v59 }
0x123a   :  { %3834 = vmatprep.subr.mxu0 %v4063_v54 }
0x123b   :  { %3835 = vmatpush3.msra.mxu0 %v2777_v23 }
0x123c   :  { %3836 = vmatprep.subr.mxu0 %v4063_v54 }
0x123d   :  { %3837 = vmatpush3.msra.mxu0 %v2776_v38 }
0x1245   :  { %v4017_v7 = vpop.eup %4016 }
0x1246   :  { %v4019_v36 = vpop.eup %4018  ;;  %v2750_v11 = vmul.f32 %v4017_v7, %v2746_v6 }
0x1247   :  { %v2751_v42 = vmul.f32 %v4019_v36, %v2747_v9  ;;  %v2916_v9 = vld [vmem:[%s5303_s15 + $0x38] sm:$0xff]  ;;  %v2915_v36 = vld [vmem:[%s5303_s15 + $0x30] sm:$0xff] }
0x1248   :  { %v2752_v44 = vadd.f32 %v2750_v11, %v4535_v46  ;;  %3842 = vmatpush3.msra.mxu1 %v2916_v9  ;;  %v2914_v11 = vld [vmem:[%s5303_s15 + $0x28] sm:$0xff] }
0x1249   :  { %v2753_v24 = vadd.f32 %v2751_v42, %v4533_v43  ;;  %3843 = vmatprep.subr.mxu1 %v4063_v54  ;;  %v2913_v42 = vld [vmem:[%s5303_s15 + $0x20] sm:$0xff] }
0x124a   :  { %4020 = vtanh.f32 %v2752_v44  ;;  %3844 = vmatpush3.msra.mxu1 %v2915_v36  ;;  %v2912_v44 = vld [vmem:[%s5303_s15 + $0x18] sm:$0xff] }
0x124b   :  { %4022 = vtanh.f32 %v2753_v24  ;;  %3845 = vmatprep.subr.mxu1 %v4063_v54  ;;  %v2911_v24 = vld [vmem:[%s5303_s15 + $0x10] sm:$0xff] }
0x124c   :  { %3846 = vmatpush3.msra.mxu1 %v2914_v11 }
0x124d   :  { %3847 = vmatprep.subr.mxu1 %v4063_v54 }
0x124e   :  { %3848 = vmatpush3.msra.mxu1 %v2913_v42 }
0x124f   :  { %3849 = vmatprep.subr.mxu1 %v4063_v54 }
0x1250   :  { %3850 = vmatpush3.msra.mxu1 %v2912_v44 }
0x1251   :  { %3851 = vmatprep.subr.mxu1 %v4063_v54 }
0x1252   :  { %3852 = vmatpush3.msra.mxu1 %v2911_v24 }
0x1253   :  { %3853 = vmatprep.subr.mxu1 %v4063_v54 }
0x1254   :  { %3854 = vmatpush3.msra.mxu1 %v2910_v39 }
0x1255   :  { %3855 = vmatprep.subr.mxu1 %v4063_v54  ;;  %v3066_v54 = vld [vmem:[%s5304_s16] ss:$0 sm:$0xff] }
0x1256   :  { %3856 = vmatpush3.msra.mxu1 %v2909_v35 }
0x1257   :  { %v4021_v46 = vpop.eup %4020 }
0x1258   :  { %v4023_v43 = vpop.eup %4022  ;;  %2760 = vrot.lane.b32.xlu1 %v4021_v46, %s4065_s30 }
0x1259   :  { %2762 = vrot.lane.b32.xlu0 %v4023_v43, %s4065_s30 }
0x1296   :  { %v2726_v60 = vpop.permute.xlu1 %2725  ;;  %v2728_v34 = vpop.permute.xlu0 %2727 }
0x1297   :  { %v2731_v61 = vadd.f32 %v2726_v60, %v4520_v12  ;;  %v2732_v10 = vadd.f32 %v2728_v34, %v4523_v15 }
0x1299   :  { %v3062_v37 = vmul.f32 -1.442695, %v2731_v61  ;;  %v3063_v41 = vmul.f32 -1.442695, %v2732_v10 }
0x129b   :  { %4024 = vpow2.f32 %v3062_v37 }
0x129c   :  { %4026 = vpow2.f32 %v3063_v41 }
0x12a8   :  { %v4025_v20 = vpop.eup %4024 }
0x12a9   :  { %v4027_v45 = vpop.eup %4026  ;;  %v2739_v47 = vadd.f32 1.0, %v4025_v20 }
0x12aa   :  { %v2740_v25 = vadd.f32 1.0, %v4027_v45 }
0x12ab   :  { %4028 = vrcp.f32 %v2739_v47 }
0x12ac   :  { %4030 = vrcp.f32 %v2740_v25 }
0x12b8   :  { %v4029_v26 = vpop.eup %4028 }
0x12b9   :  { %v4031_v27 = vpop.eup %4030  ;;  %v2756_v29 = vsub.f32 1.0, %v4029_v26  ;;  %v2772_v50 = vmul.f32 %v4029_v26, %v2768_v28 }
0x12ba   :  { %v2757_v12 = vsub.f32 1.0, %v4031_v27  ;;  %v2773_v62 = vmul.f32 %v4031_v27, %v2769_v13 }
0x12ca   :  { %v2761_v48 = vpop.permute.xlu1 %2760 }
0x12cb   :  { %v2763_v15 = vpop.permute.xlu0 %2762  ;;  %v2766_v31 = vmul.f32 %v2761_v48, %v2756_v29 }
0x12cc   :  { %v2767_v40 = vmul.f32 %v2763_v15, %v2757_v12 }
0x12cd   :  { %v2774_v33 = vadd.f32 %v2772_v50, %v2766_v31 }
0x12ce   :  { %v2775_v52 = vadd.f32 %v2773_v62, %v2767_v40 }
0x12cf   :  { %v2793_v53 = vrot.slane %v2774_v33, 7 }
0x12d0   :  { %v2794_v14 = vrot.slane %v2775_v52, 6 }
0x12d2   :  { %v2795_v63 = vsel %vm740_vm3, %v2794_v14, %v2793_v53 }
0x12d3   :  { %2796 = vrot.lane.b32.xlu1 %v2795_v63, %s4065_s30 }
0x1345   :  { %v2797_v0 = vpop.permute.xlu1 %2796 }
0x1346   :  { %3839 = vmatmul.mubr.msk.f32.vlgmr.msra.gmra.mxu0 %vm274_vm1, %v2797_v0 }
0x1406   :  { %v2866_v49 = vpop.f32.mrf.mxu0 }
0x1407   :  { %v2867_v17 = vadd.f32 %v3064_v30, %v2866_v49 }
0x1408   :  { %v3840_v51 = vpop.f32.mrf.mxu0 }
0x1409   :  { %v2870_v32 = vmax.f32 %v2867_v17, 0.0 }
0x140b   :  { %2887 = vrot.lane.b32.xlu0 %v2870_v32, %s4066_s3  ;;  %v2872_v16 = vsel %vm2871_vm4, %v2870_v32, 0.0 }
0x142a   :  { %2873 = vadd.xlane.f32.xlu0 %v2872_v16 }
0x147d   :  { %v2888_v19 = vpop.permute.xlu0 %2887 }
0x147e   :  { %v2890_v18 = vsel %vm2871_vm4, %v2888_v19, 0.0 }
0x147f   :  { %2891 = vadd.xlane.f32.xlu1 %v2890_v18 }
0x14b3   :  { %v2874_v22 = vpop.xlane.xlu0 %2873 }
0x14b4   :  { %v2876_v21 = vmul.f32 0.03125, %v2874_v22 }
0x14b6   :  { %v2877_v3 = vsub.f32 %v2870_v32, %v2876_v21 }
0x14b8   :  { %v2878_v56 = vmul.f32 %v2877_v3, %v2877_v3 }
0x14ba   :  { %v2879_v8 = vsel %vm2871_vm4, %v2878_v56, 0.0 }
0x14bb   :  { %2880 = vadd.xlane.f32.xlu1 %v2879_v8 }
0x1508   :  { %v2892_v4 = vpop.xlane.xlu1 %2891 }
0x1509   :  { %v2893_v1 = vmul.f32 0.03125, %v2892_v4 }
0x150b   :  { %v2894_v2 = vsub.f32 %v2870_v32, %v2893_v1 }
0x150d   :  { %v2895_v5 = vmul.f32 %v2894_v2, %v2894_v2 }
0x150f   :  { %2897 = vrot.lane.b32.xlu0 %v2895_v5, %s4066_s3 }
0x1544   :  { %v2881_v55 = vpop.xlane.xlu1 %2880 }
0x1545   :  { %v2882_v46 = vmul.f32 0.03125, %v2881_v55 }
0x1547   :  { %v2883_v43 = vadd.f32 1e-05, %v2882_v46 }
0x1549   :  { %4032 = vrsqrt.f32 %v2883_v43 }
0x1556   :  { %v4033_v23 = vpop.eup %4032 }
0x1557   :  { %v2885_v60 = vmul.f32 %v4033_v23, %v2877_v3 }
0x1581   :  { %v2898_v6 = vpop.permute.xlu0 %2897 }
0x1582   :  { %v2900_v7 = vsel %vm2871_vm4, %v2898_v6, 0.0 }
0x1583   :  { %2901 = vadd.xlane.f32.xlu1 %v2900_v7 }
0x160c   :  { %v2902_v57 = vpop.xlane.xlu1 %2901 }
0x160d   :  { %v2903_v58 = vmul.f32 0.03125, %v2902_v57 }
0x160f   :  { %v2904_v59 = vadd.f32 1e-05, %v2903_v58 }
0x1611   :  { %4034 = vrsqrt.f32 %v2904_v59 }
0x161e   :  { %v4035_v38 = vpop.eup %4034 }
0x161f   :  { %v2906_v34 = vmul.f32 %v4035_v38, %v2894_v2 }
0x1621   :  { %v2908_v61 = vsel %vm2907_vm5, %v2885_v60, %v2906_v34 }
0x1622   :  { %3858 = vmatmul.mubr.msk.f32.vlgmr.msra.gmra.mxu1 %vm274_vm1, %v2908_v61 }
0x16e2   :  { %v2993_v10 = vpop.f32.mrf.mxu1 }
0x16e3   :  { %v2994_v37 = vadd.f32 %v3066_v54, %v2993_v10 }
0x16e4   :  { %v3859_v41 = vpop.f32.mrf.mxu1 }
0x16e5   :  { %2997 = vst [vmem:[%s5305_s17] sm:$0x3] %v2994_v37 }

</bundles_post_ra>
